<compile_context>
chip_gen: v7x
topology: tpu7x:2x2x1
jax: 0.10.0
libtpu: 0.0.40
codegen_flags: <defaults>
</compile_context>

<pallas_src>
import functools

import jax
import jax.numpy as jnp
from jax.experimental import pallas as pl
from jax.experimental.pallas import tpu as pltpu


def _round_up(x, m):
    return (x + m - 1) // m * m


def cnn_text_kernel(time_tile, emb_ref, w_ref, b_ref, mask_ref,
                    fcw_ref, fcb_ref, out_ref):
    """One batch tile of the fused TextCNN forward.

    emb_ref : (TN, L_emb, D)      bf16  zero-padded embedded tokens
    w_ref   : (Kmax, D, F_pad)    bf16  fused conv weights (all branches)
    b_ref   : (1, F_pad)          f32   fused conv bias
    mask_ref: (T_out, F_pad)      f32   0 where position valid, -1e30 otherwise
    fcw_ref : (F_pad, C_pad)      bf16  fused fc weight
    fcb_ref : (1, C_pad)          f32   fc bias
    out_ref : (TN, C_pad)         f32   logits (padded classes)
    """
    tn = emb_ref.shape[0]
    kmax = w_ref.shape[0]
    f_pad = w_ref.shape[2]
    t_out = mask_ref.shape[0]
    n_chunks = t_out // time_tile  # static

    run_max = jnp.full((tn, f_pad), -1e30, dtype=jnp.float32)

    # Streaming max-over-time: only one (TN, TT, F_pad) chunk is live at a time.
    for c in range(n_chunks):
        t0 = c * time_tile
        acc = jnp.zeros((tn, time_tile, f_pad), jnp.float32)
        # Fused conv: Kmax wide matmuls (all kernel sizes / all channels at once).
        for k in range(kmax):
            xk = emb_ref[:, t0 + k:t0 + k + time_tile, :]        # (TN, TT, D) bf16
            acc = acc + jax.lax.dot_general(
                xk, w_ref[k],
                dimension_numbers=(((2,), (0,)), ((), ())),
                preferred_element_type=jnp.float32)
        # Knock out positions that are invalid for a given branch (and the
        # zero time padding), then fold into the running max.
        acc = acc + mask_ref[t0:t0 + time_tile, :][None]
        run_max = jnp.maximum(run_max, jnp.max(acc, axis=1))

    # relu(max_t(conv) + b) == max_t(relu(conv + b))  (relu is monotone)
    feat = jnp.maximum(run_max + b_ref[...], 0.0)                 # (TN, F_pad) f32
    # TODO(synk): dropout implemented as eval-mode identity (training-mode Bernoulli mask omitted)
    logits = jnp.dot(feat.astype(fcw_ref.dtype), fcw_ref[...],
                     preferred_element_type=jnp.float32) + fcb_ref[...]
    out_ref[...] = logits.astype(out_ref.dtype)


def cnn_text_forward(tokens, embed_table, conv_params, fc_w, fc_b, ks,
                     *, batch_tile=8, time_tile=256):
    """tokens: (N, L) int32, embed_table: (V, D).

    conv_params: list of (w, b) per kernel size, w: (K, D, Co), b: (Co,)
                 (equivalent to torch Conv2d weight (Co, 1, K, D) transposed).
    fc_w: (len(ks)*Co, C), fc_b: (C,).
    batch_tile / time_tile are the VMEM tiling knobs; raise batch_tile for real
    workloads (keep the double-buffered emb tile + chunk accumulator well under
    the ~32 MiB scoped VMEM budget, half of that headroom on v7x).
    """
    ks = tuple(int(k) for k in ks)
    N, L = tokens.shape
    D = embed_table.shape[1]
    C = fc_w.shape[1]
    Co = conv_params[0][0].shape[-1]
    n_br = len(ks)
    kmax, kmin = max(ks), min(ks)

    co_pad = _round_up(Co, 128)          # lane-dense per-branch channel block
    c_pad = _round_up(C, 128)            # lane-dense logits
    f_pad = n_br * co_pad

    # Time chunking (streaming max keeps the conv accumulator small).
    t_valid = L - kmin + 1
    tt = min(_round_up(time_tile, 8), _round_up(t_valid, 8))
    t_out = _round_up(t_valid, tt)
    l_emb = t_out + kmax - 1             # zero-pad time so every chunk is full

    # Batch tiling.
    tn = _round_up(batch_tile, 8)
    n_pad = _round_up(N, tn)

    # ---- fused, lane-padded parameters (bf16 matmul operands, f32 biases) ----
    w_all = jnp.zeros((kmax, D, f_pad), jnp.float32)
    b_all = jnp.zeros((1, f_pad), jnp.float32)
    for i, (K, (w, b)) in enumerate(zip(ks, conv_params)):
        w_all = w_all.at[:K, :, i * co_pad:i * co_pad + Co].set(w.astype(jnp.float32))
        b_all = b_all.at[0, i * co_pad:i * co_pad + Co].set(b.astype(jnp.float32))
    w_all = w_all.astype(jnp.bfloat16)

    fcw_pad = jnp.zeros((f_pad, c_pad), jnp.float32)
    for i in range(n_br):
        fcw_pad = fcw_pad.at[i * co_pad:i * co_pad + Co, :C].set(
            fc_w[i * Co:(i + 1) * Co, :].astype(jnp.float32))
    fcw_pad = fcw_pad.astype(jnp.bfloat16)
    fcb_pad = jnp.zeros((1, c_pad), jnp.float32).at[0, :C].set(fc_b.astype(jnp.float32))

    # Additive validity mask: 0 where conv position t is valid for that branch.
    t_idx = jnp.arange(t_out, dtype=jnp.int32)[:, None]
    cols = [jnp.broadcast_to(
                jnp.where(t_idx <= (L - K), 0.0, -1e30).astype(jnp.float32),
                (t_out, co_pad))
            for K in ks]
    mask = jnp.concatenate(cols, axis=1)                           # (T_out, F_pad)

    # ---- embedding lookup (gather stays in JAX glue); pad batch & time; bf16 ----
    tok = jnp.pad(tokens, ((0, n_pad - N), (0, 0)))
    emb = jnp.take(embed_table, tok, axis=0)                       # (N_pad, L, D)
    emb = jnp.pad(emb, ((0, 0), (0, l_emb - L), (0, 0))).astype(jnp.bfloat16)

    flops = 2 * n_pad * t_out * kmax * D * f_pad + 2 * n_pad * f_pad * c_pad
    bytes_accessed = (emb.size * 2 + w_all.size * 2 + fcw_pad.size * 2
                      + (b_all.size + fcb_pad.size + mask.size) * 4
                      + n_pad * c_pad * 4)

    kernel = functools.partial(cnn_text_kernel, tt)
    out = pl.pallas_call(
        kernel,
        out_shape=jax.ShapeDtypeStruct((n_pad, c_pad), jnp.float32),
        grid_spec=pltpu.PrefetchScalarGridSpec(
            num_scalar_prefetch=0,
            grid=(n_pad // tn,),
            in_specs=[
                # activations: tiled over batch -> auto-pipelined HBM->VMEM DMA
                pl.BlockSpec((tn, l_emb, D), lambda i: (i, 0, 0)),
                # parameters: constant block index -> stay resident in VMEM
                pl.BlockSpec((kmax, D, f_pad), lambda i: (0, 0, 0)),
                pl.BlockSpec((1, f_pad), lambda i: (0, 0)),
                pl.BlockSpec((t_out, f_pad), lambda i: (0, 0)),
                pl.BlockSpec((f_pad, c_pad), lambda i: (0, 0)),
                pl.BlockSpec((1, c_pad), lambda i: (0, 0)),
            ],
            out_specs=pl.BlockSpec((tn, c_pad), lambda i: (i, 0)),
        ),
        compiler_params=pltpu.CompilerParams(
            dimension_semantics=("parallel",)),       # 2-TC sharding on v7x
        cost_estimate=pl.CostEstimate(
            flops=flops, transcendentals=0, bytes_accessed=bytes_accessed),
    )(emb, w_all, b_all, mask, fcw_pad, fcb_pad)

    return out[:N, :C]


if __name__ == "__main__":
    # Small config consistent with the module:
    #   args.embed_num=V, args.embed_dim=D, args.class_num=C,
    #   args.kernel_num=Co, args.kernel_sizes=Ks
    V, D, C, Co = 100, 32, 4, 8
    Ks = (3, 4, 5)
    N, L = 2, 16

    key = jax.random.PRNGKey(0)
    keys = jax.random.split(key, 9)

    def bf16_round(x):  # keep demo params bf16-representable for a tight check
        return x.astype(jnp.bfloat16).astype(jnp.float32)

    tokens = jax.random.randint(keys[0], (N, L), 0, V, dtype=jnp.int32)
    embed_table = bf16_round(0.1 * jax.random.normal(keys[1], (V, D), jnp.float32))

    conv_params = []
    for i, K in enumerate(Ks):
        wk = jax.random.normal(keys[2 + 2 * i], (K, D, Co), jnp.float32)
        wk = bf16_round(wk * (1.0 / (K * D) ** 0.5))
        bk = bf16_round(0.01 * jax.random.normal(keys[3 + 2 * i], (Co,), jnp.float32))
        conv_params.append((wk, bk))

    fc_w = bf16_round(0.1 * jax.random.normal(keys[8], (len(Ks) * Co, C), jnp.float32))
    fc_b = jnp.zeros((C,), jnp.float32)

    logits = cnn_text_forward(tokens, embed_table, conv_params, fc_w, fc_b, Ks)
    jax.block_until_ready(logits)

    # Pure-JAX reference of the PyTorch forward (eval mode).
    emb = jnp.take(embed_table, tokens, axis=0)
    feats = []
    for (w, b) in conv_params:
        K = w.shape[0]
        T = L - K + 1
        conv = sum(jnp.einsum("ntd,dc->ntc", emb[:, k:k + T, :], w[k])
                   for k in range(K))
        feats.append(jnp.max(jax.nn.relu(conv + b), axis=1))
    ref = jnp.concatenate(feats, axis=1) @ fc_w + fc_b

    assert logits.shape == (N, C) and logits.dtype == jnp.float32
    assert jnp.allclose(logits, ref, atol=2e-2, rtol=2e-2)
    print("KERNEL_OK")
</pallas_src>

<mosaic_0001>
module attributes {stable_mosaic.version = 11 : i64} {
  func.func @cnn_text_kernel(%arg0: i32, %arg1: memref<8x20x32xbf16, #tpu.memory_space<vmem>>, %arg2: memref<5x32x384xbf16, #tpu.memory_space<vmem>>, %arg3: memref<1x384xf32, #tpu.memory_space<vmem>>, %arg4: memref<16x384xf32, #tpu.memory_space<vmem>>, %arg5: memref<384x128xbf16, #tpu.memory_space<vmem>>, %arg6: memref<1x128xf32, #tpu.memory_space<vmem>>, %arg7: memref<8x128xf32, #tpu.memory_space<vmem>>) attributes {dimension_semantics = [#tpu.dimension_semantics<parallel>], iteration_bounds = array<i64: 1>, scalar_prefetch = 0 : i64, scratch_operands = 0 : i64, tpu.core_type = #tpu.core_type<tc>, window_params = [{transform_indices = @transform_0, window_bounds = array<i64: 8, 20, 32>}, {pipeline_mode = #tpu.pipeline_mode<synchronous>, transform_indices = @transform_1, window_bounds = array<i64: 5, 32, 384>}, {pipeline_mode = #tpu.pipeline_mode<synchronous>, transform_indices = @transform_2, window_bounds = array<i64: 1, 384>}, {pipeline_mode = #tpu.pipeline_mode<synchronous>, transform_indices = @transform_3, window_bounds = array<i64: 16, 384>}, {pipeline_mode = #tpu.pipeline_mode<synchronous>, transform_indices = @transform_4, window_bounds = array<i64: 384, 128>}, {pipeline_mode = #tpu.pipeline_mode<synchronous>, transform_indices = @transform_5, window_bounds = array<i64: 1, 128>}, {transform_indices = @transform_6, window_bounds = array<i64: 8, 128>}]} {
    %cst = arith.constant -1.000000e+30 : f32
    %0 = vector.broadcast %cst : f32 to vector<8x384xf32>
    %cst_0 = arith.constant 0.000000e+00 : f32
    %1 = vector.broadcast %cst_0 : f32 to vector<8x16x384xf32>
    %c0 = arith.constant 0 : index
    %c0_1 = arith.constant 0 : index
    %c0_2 = arith.constant 0 : index
    %2 = vector.load %arg1[%c0, %c0_1, %c0_2] : memref<8x20x32xbf16, #tpu.memory_space<vmem>>, vector<8x16x32xbf16>
    %c0_3 = arith.constant 0 : index
    %c0_4 = arith.constant 0 : index
    %c0_5 = arith.constant 0 : index
    %3 = vector.load %arg2[%c0_3, %c0_4, %c0_5] : memref<5x32x384xbf16, #tpu.memory_space<vmem>>, vector<1x32x384xbf16>
    %4 = vector.shape_cast %3 : vector<1x32x384xbf16> to vector<32x384xbf16>
    %cst_6 = arith.constant dense<0.000000e+00> : vector<8x16x384xf32>
    %5 = tpu.matmul %2, %4, %cst_6 {dimension_numbers = #tpu.dot_dimension_numbers<[2], [0], [0, 1], [1], [0, 0, 0, 1, 1, 1], [], []>} : vector<8x16x32xbf16>, vector<32x384xbf16>, vector<8x16x384xf32> -> vector<8x16x384xf32>
    %6 = arith.addf %1, %5 : vector<8x16x384xf32>
    %c0_7 = arith.constant 0 : index
    %c1 = arith.constant 1 : index
    %c0_8 = arith.constant 0 : index
    %7 = vector.load %arg1[%c0_7, %c1, %c0_8] : memref<8x20x32xbf16, #tpu.memory_space<vmem>>, vector<8x16x32xbf16>
    %c1_9 = arith.constant 1 : index
    %c0_10 = arith.constant 0 : index
    %c0_11 = arith.constant 0 : index
    %8 = vector.load %arg2[%c1_9, %c0_10, %c0_11] : memref<5x32x384xbf16, #tpu.memory_space<vmem>>, vector<1x32x384xbf16>
    %9 = vector.shape_cast %8 : vector<1x32x384xbf16> to vector<32x384xbf16>
    %cst_12 = arith.constant dense<0.000000e+00> : vector<8x16x384xf32>
    %10 = tpu.matmul %7, %9, %cst_12 {dimension_numbers = #tpu.dot_dimension_numbers<[2], [0], [0, 1], [1], [0, 0, 0, 1, 1, 1], [], []>} : vector<8x16x32xbf16>, vector<32x384xbf16>, vector<8x16x384xf32> -> vector<8x16x384xf32>
    %11 = arith.addf %6, %10 : vector<8x16x384xf32>
    %c0_13 = arith.constant 0 : index
    %c2 = arith.constant 2 : index
    %c0_14 = arith.constant 0 : index
    %12 = vector.load %arg1[%c0_13, %c2, %c0_14] : memref<8x20x32xbf16, #tpu.memory_space<vmem>>, vector<8x16x32xbf16>
    %c2_15 = arith.constant 2 : index
    %c0_16 = arith.constant 0 : index
    %c0_17 = arith.constant 0 : index
    %13 = vector.load %arg2[%c2_15, %c0_16, %c0_17] : memref<5x32x384xbf16, #tpu.memory_space<vmem>>, vector<1x32x384xbf16>
    %14 = vector.shape_cast %13 : vector<1x32x384xbf16> to vector<32x384xbf16>
    %cst_18 = arith.constant dense<0.000000e+00> : vector<8x16x384xf32>
    %15 = tpu.matmul %12, %14, %cst_18 {dimension_numbers = #tpu.dot_dimension_numbers<[2], [0], [0, 1], [1], [0, 0, 0, 1, 1, 1], [], []>} : vector<8x16x32xbf16>, vector<32x384xbf16>, vector<8x16x384xf32> -> vector<8x16x384xf32>
    %16 = arith.addf %11, %15 : vector<8x16x384xf32>
    %c0_19 = arith.constant 0 : index
    %c3 = arith.constant 3 : index
    %c0_20 = arith.constant 0 : index
    %17 = vector.load %arg1[%c0_19, %c3, %c0_20] : memref<8x20x32xbf16, #tpu.memory_space<vmem>>, vector<8x16x32xbf16>
    %c3_21 = arith.constant 3 : index
    %c0_22 = arith.constant 0 : index
    %c0_23 = arith.constant 0 : index
    %18 = vector.load %arg2[%c3_21, %c0_22, %c0_23] : memref<5x32x384xbf16, #tpu.memory_space<vmem>>, vector<1x32x384xbf16>
    %19 = vector.shape_cast %18 : vector<1x32x384xbf16> to vector<32x384xbf16>
    %cst_24 = arith.constant dense<0.000000e+00> : vector<8x16x384xf32>
    %20 = tpu.matmul %17, %19, %cst_24 {dimension_numbers = #tpu.dot_dimension_numbers<[2], [0], [0, 1], [1], [0, 0, 0, 1, 1, 1], [], []>} : vector<8x16x32xbf16>, vector<32x384xbf16>, vector<8x16x384xf32> -> vector<8x16x384xf32>
    %21 = arith.addf %16, %20 : vector<8x16x384xf32>
    %c0_25 = arith.constant 0 : index
    %c4 = arith.constant 4 : index
    %c0_26 = arith.constant 0 : index
    %22 = vector.load %arg1[%c0_25, %c4, %c0_26] : memref<8x20x32xbf16, #tpu.memory_space<vmem>>, vector<8x16x32xbf16>
    %c4_27 = arith.constant 4 : index
    %c0_28 = arith.constant 0 : index
    %c0_29 = arith.constant 0 : index
    %23 = vector.load %arg2[%c4_27, %c0_28, %c0_29] : memref<5x32x384xbf16, #tpu.memory_space<vmem>>, vector<1x32x384xbf16>
    %24 = vector.shape_cast %23 : vector<1x32x384xbf16> to vector<32x384xbf16>
    %cst_30 = arith.constant dense<0.000000e+00> : vector<8x16x384xf32>
    %25 = tpu.matmul %22, %24, %cst_30 {dimension_numbers = #tpu.dot_dimension_numbers<[2], [0], [0, 1], [1], [0, 0, 0, 1, 1, 1], [], []>} : vector<8x16x32xbf16>, vector<32x384xbf16>, vector<8x16x384xf32> -> vector<8x16x384xf32>
    %26 = arith.addf %21, %25 : vector<8x16x384xf32>
    %c0_31 = arith.constant 0 : index
    %c0_32 = arith.constant 0 : index
    %27 = vector.load %arg4[%c0_31, %c0_32] : memref<16x384xf32, #tpu.memory_space<vmem>>, vector<16x384xf32>
    %28 = vector.shape_cast %27 : vector<16x384xf32> to vector<1x16x384xf32>
    %29 = vector.broadcast %28 : vector<1x16x384xf32> to vector<8x16x384xf32>
    %30 = arith.addf %26, %29 : vector<8x16x384xf32>
    %cst_33 = arith.constant dense<0xFF800000> : vector<8x384xf32>
    %31 = vector.multi_reduction <maximumf>, %30, %cst_33 [1] : vector<8x16x384xf32> to vector<8x384xf32>
    %32 = arith.maximumf %0, %31 : vector<8x384xf32>
    %c0_34 = arith.constant 0 : index
    %c0_35 = arith.constant 0 : index
    %33 = vector.load %arg3[%c0_34, %c0_35] : memref<1x384xf32, #tpu.memory_space<vmem>>, vector<1x384xf32>
    %34 = vector.broadcast %33 : vector<1x384xf32> to vector<8x384xf32>
    %35 = arith.addf %32, %34 : vector<8x384xf32>
    %cst_36 = arith.constant 0.000000e+00 : f32
    %36 = vector.broadcast %cst_36 : f32 to vector<8x384xf32>
    %37 = arith.maximumf %35, %36 : vector<8x384xf32>
    %38 = arith.truncf %37 : vector<8x384xf32> to vector<8x384xbf16>
    %c0_37 = arith.constant 0 : index
    %c0_38 = arith.constant 0 : index
    %39 = vector.load %arg5[%c0_37, %c0_38] : memref<384x128xbf16, #tpu.memory_space<vmem>>, vector<384x128xbf16>
    %cst_39 = arith.constant dense<0.000000e+00> : vector<8x128xf32>
    %40 = tpu.matmul %38, %39, %cst_39 {dimension_numbers = #tpu.dot_dimension_numbers<[1], [0], [0], [1], [0, 0, 1, 1], [], []>} : vector<8x384xbf16>, vector<384x128xbf16>, vector<8x128xf32> -> vector<8x128xf32>
    %c0_40 = arith.constant 0 : index
    %c0_41 = arith.constant 0 : index
    %41 = vector.load %arg6[%c0_40, %c0_41] : memref<1x128xf32, #tpu.memory_space<vmem>>, vector<1x128xf32>
    %42 = vector.broadcast %41 : vector<1x128xf32> to vector<8x128xf32>
    %43 = arith.addf %40, %42 : vector<8x128xf32>
    %c0_42 = arith.constant 0 : index
    %c0_43 = arith.constant 0 : index
    %44 = vector.load %arg7[%c0_42, %c0_43] : memref<8x128xf32, #tpu.memory_space<vmem>>, vector<8x128xf32>
    tpu.vector_store %arg7[%c0_42, %c0_43], %43 {strides = array<i32>} : memref<8x128xf32, #tpu.memory_space<vmem>>, vector<8x128xf32>,
    return
  }
  func.func @transform_0(%arg0: i32) -> (i32, i32, i32) {
    %c0_i32 = arith.constant 0 : i32
    %c0_i32_0 = arith.constant 0 : i32
    %c0_i32_1 = arith.constant 0 : i32
    return %arg0, %c0_i32, %c0_i32_0 : i32, i32, i32
  }
  func.func @transform_1(%arg0: i32) -> (i32, i32, i32) {
    %c0_i32 = arith.constant 0 : i32
    %c0_i32_0 = arith.constant 0 : i32
    %c0_i32_1 = arith.constant 0 : i32
    %c0_i32_2 = arith.constant 0 : i32
    return %c0_i32, %c0_i32_0, %c0_i32_1 : i32, i32, i32
  }
  func.func @transform_2(%arg0: i32) -> (i32, i32) {
    %c0_i32 = arith.constant 0 : i32
    %c0_i32_0 = arith.constant 0 : i32
    %c0_i32_1 = arith.constant 0 : i32
    return %c0_i32, %c0_i32_0 : i32, i32
  }
  func.func @transform_3(%arg0: i32) -> (i32, i32) {
    %c0_i32 = arith.constant 0 : i32
    %c0_i32_0 = arith.constant 0 : i32
    %c0_i32_1 = arith.constant 0 : i32
    return %c0_i32, %c0_i32_0 : i32, i32
  }
  func.func @transform_4(%arg0: i32) -> (i32, i32) {
    %c0_i32 = arith.constant 0 : i32
    %c0_i32_0 = arith.constant 0 : i32
    %c0_i32_1 = arith.constant 0 : i32
    return %c0_i32, %c0_i32_0 : i32, i32
  }
  func.func @transform_5(%arg0: i32) -> (i32, i32) {
    %c0_i32 = arith.constant 0 : i32
    %c0_i32_0 = arith.constant 0 : i32
    %c0_i32_1 = arith.constant 0 : i32
    return %c0_i32, %c0_i32_0 : i32, i32
  }
  func.func @transform_6(%arg0: i32) -> (i32, i32) {
    %c0_i32 = arith.constant 0 : i32
    %c0_i32_0 = arith.constant 0 : i32
    return %arg0, %c0_i32 : i32, i32
  }
}

</mosaic_0001>

<bundles_post_ra>
// kernel: tpu_custom_call.1
= control target key start
LH: loop header
LB: loop body
LE: loop exit
PB: predicated region body
PF: predicated region fallthrough
CT: control target
= control target key end

     0   :  { %11 = vsyncpa [#allocation3], 0  ;;  %s5044_s0 = inlined_call_operand.vmem [shape: bf16[8,20,32], index: 0, kind: input, shape index: {}]   ;;  %s5045_s1 = inlined_call_operand.hbm [shape: bf16[5,32,384], index: 1, kind: input, shape index: {}]   ;;  %s5046_s2 = inlined_call_operand.vmem [shape: f32[1,384], index: 2, kind: input, shape index: {}]   ;;  %s5047_s3 = inlined_call_operand.vmem [shape: f32[16,384], index: 3, kind: input, shape index: {}]   ;;  %s5048_s4 = inlined_call_operand.hbm [shape: bf16[384,128], index: 4, kind: input, shape index: {}]   ;;  %s5049_s5 = inlined_call_operand.vmem [shape: f32[1,128], index: 5, kind: input, shape index: {}]   ;;  %s5050_s6 = inlined_call_operand.hbm [shape: f32[8,128], index: 6, kind: output, shape index: {}]  }
   0x1   :  { %12 = vsyncpa [#allocation6], 0 }
   0x2   :  { %13 = vsyncpa [#allocation4], 0  ;;  %s3764_s21 = smov [#allocation2]   ;;  %s3692_s25 = scalar_lea.hbm %s5045_s1, 3840 }
   0x3   :  { %s21_s22 = sshll.u32 %s3764_s21, 4  ;;  %p3693_p0 = scmp.ne.s32.totalorder %s5045_s1, %s3692_s25  ;;  %s22_s22 = int_to_ptr.vmem [resolvable:$true] %s21_s22 }
   0x4   :  { %p3696_p1 = scmp.lt.u32.totalorder %s3692_s25, %s5045_s1 }
   0x6   :  { %p3698_p2 = pnand %p3696_p1, %p3693_p0 }
   0x8   :  { %3701 = shalt.err (!%p3698_p2)
}
   0x9   :  { %s3702_s30 = scalar_lea.vmem %s22_s22, 3840  ;;  %p3707_p4 = scmp.lt.s32.totalorder %s22_s22, %s22_s22 }
   0xa   :  { %p3703_p3 = scmp.ne.s32.totalorder %s22_s22, %s3702_s30  ;;  %p3708_p5 = scmp.lt.s32.totalorder %s3702_s30, %s3702_s30 }
   0xc   :  { %p3709_p6 = por %p3708_p5, %p3707_p4 }
   0xe   :  { %p3710_p7 = pnand %p3709_p6, %p3703_p3 }
  0x10   :  { %3713 = shalt.err (!%p3710_p7)
}
  0x11   :  { %s3765_s7 = smov 192   ;;  %s3766_s8 = smov 12  }
  0x12   :  { %27 = dma.hbm_to_vmem [thread:$0]  %s5045_s1, 3840, %s22_s22, [#allocation3], %s3765_s7, %s3765_s7, %s3766_s8  }
  0x13   :  { %s3767_s11 = smov [#allocation5]   ;;  %s3714_s15 = scalar_lea.hbm %s5048_s4, 3072 }
  0x14   :  { %s37_s12 = sshll.u32 %s3767_s11, 4  ;;  %p3715_p8 = scmp.ne.s32.totalorder %s5048_s4, %s3714_s15  ;;  %s38_s12 = int_to_ptr.vmem [resolvable:$true] %s37_s12 }
  0x15   :  { %p3718_p9 = scmp.lt.u32.totalorder %s3714_s15, %s5048_s4 }
  0x17   :  { %p3720_p10 = pnand %p3718_p9, %p3715_p8 }
  0x19   :  { %3723 = shalt.err (!%p3720_p10)
}
  0x1a   :  { %s3724_s20 = scalar_lea.vmem %s38_s12, 3072  ;;  %p3729_p12 = scmp.lt.s32.totalorder %s38_s12, %s38_s12 }
  0x1b   :  { %p3725_p11 = scmp.ne.s32.totalorder %s38_s12, %s3724_s20  ;;  %p3730_p13 = scmp.lt.s32.totalorder %s3724_s20, %s3724_s20 }
  0x1d   :  { %p3731_p0 = por %p3730_p13, %p3729_p12 }
  0x1f   :  { %p3732_p1 = pnand %p3731_p0, %p3725_p11 }
  0x21   :  { %3735 = shalt.err (!%p3732_p1)
}
  0x22   :  { %s3768_s1 = smov 64   ;;  %s3769_s21 = smov 4  }
  0x23   :  { %43 = dma.hbm_to_vmem [thread:$0]  %s5048_s4, 3072, %s38_s12, [#allocation6], %s3768_s1, %s3768_s1, %s3769_s21  }
  0x24   :  { %3758 = dma.done.wait [#allocation3], 3840  }
  0x25   :  { %3759 = vsyncadd [#allocation3], 4294963456 }
  0x26   :  { %3760 = dma.done.wait [#allocation6], 3072  }
  0x27   :  { %3761 = vsyncadd [#allocation6], 4294964224  ;;  %v3770_v0 = vmov 0   ;;  %v3616_v1 = vld [vmem:[#allocation2 + $0x4] ss:$12 sps:$4 sm:$0xff]   ;;  %vm345_vm2 = vcmask 261120  }
  0x28   :  { %708 = vmatprep.mubr.bf16.mxu0 %v3770_v0  ;;  %402 = vmatprep.mubr.bf16.mxu1 %v3770_v0  ;;  %v3618_v2 = vld [vmem:[#allocation2 + $0x34] ss:$12 sps:$4 sm:$0xff]   ;;  %vm94_vm0 = vsmask.f32 3328  ;;  %v3621_v4 = vld [vmem:[#allocation2 + $0x30] ss:$12 sps:$4 sm:$0xff]  }
  0x29   :  { %676 = vmatprep.subr.bf16.mxu0 %v3616_v1  ;;  %v3620_v3 = vld [vmem:[#allocation2] ss:$12 sps:$4 sm:$0xff]   ;;  %370 = vmatprep.subr.bf16.mxu1 %v3618_v2  ;;  %v3622_v5 = vld [vmem:[#allocation2 + $0x1c] ss:$12 sps:$4 sm:$0xff]   ;;  %vm95_vm1 = vsmask.f32 7440 }
  0x2a   :  { %677 = vmatpush1.bf16.msra.mxu0 %v3620_v3  ;;  %371 = vmatpush1.bf16.msra.mxu1 %v3621_v4  ;;  %v3624_v6 = vld [vmem:[#allocation2 + $0x4c] ss:$12 sps:$4 sm:$0xff]   ;;  %v3627_v8 = vld [vmem:[#allocation2 + $0x48] ss:$12 sps:$4 sm:$0xff]   ;;  %v53_v9 = vld [vmem:[%s5044_s0] sm:$0xf] }
  0x2b   :  { %v3626_v7 = vld [vmem:[#allocation2 + $0x18] ss:$12 sps:$4 sm:$0xff]   ;;  %678 = vmatprep.subr.bf16.mxu0 %v3622_v5  ;;  %372 = vmatprep.subr.bf16.mxu1 %v3624_v6  ;;  %v98_v11 = vshrl.u32 %v53_v9, 16  ;;  %v101_v12 = vshll.u32 %v53_v9, 16  ;;  %v3629_v14 = vld [vmem:[#allocation2 + $0x60] ss:$12 sps:$4 sm:$0xff]   ;;  %vm3866_vm3 = vmor %vm94_vm0, %vm95_vm1 }
  0x2c   :  { %v3841_v10 = vld [vmem:[%s5044_s0 + $0x4] sm:$0xf]  ;;  %v3850_v19 = vld [vmem:[%s5044_s0 + $0x8] sm:$0x1]  ;;  %v55_v23 = vld [vmem:[%s5044_s0 + $0xc] sm:$0xf] }
  0x2d   :  { %v3844_v13 = vcombine.low %v53_v9, %v3841_v10  ;;  %v3631_v15 = vld [vmem:[#allocation2 + $0x64] ss:$12 sps:$4 sm:$0xff]   ;;  %v107_v16 = vshll.u32 %v3841_v10, 16  ;;  %v100_v17 = vrot.slane %v98_v11, 4  ;;  %v103_v18 = vrot.slane %v101_v12, 5  ;;  %s3773_s12 = smov [#allocation7]  }
  0x2e   :  { %679 = vmatpush1.bf16.msra.mxu0 %v3626_v7  ;;  %373 = vmatpush1.bf16.msra.mxu1 %v3627_v8  ;;  %v111_v20 = vshrl.u32 %v3841_v10, 16  ;;  %v117_v22 = vshll.u32 %v3850_v19, 16  ;;  %v3860_v28 = vld [vmem:[%s5044_s0 + $0x10] sm:$0xf]  ;;  %v122_v30 = vshrl.u32 %v55_v23, 16  ;;  %v125_v31 = vshll.u32 %v55_v23, 16 }
  0x2f   :  { %1058 = vmatprep.subr.bf16.mxu0 %v3631_v15  ;;  %v109_v21 = vrot.slane %v107_v16, 5  ;;  %v104_v24 = vor.u32 %v103_v18, %v100_v17  ;;  %v1346_v27 = vrot.slane %v107_v16, 6  ;;  %v3876_v36 = vld [vmem:[%s5044_s0 + $0x14] sm:$0x1]  ;;  %v131_v39 = vshll.u32 %v3860_v28, 16  ;;  %s3012_s13 = sshll.u32 %s3773_s12, 4  ;;  %s3013_s13 = int_to_ptr.vmem [resolvable:$true] %s3012_s13 }
  0x30   :  { %v113_v25 = vrot.slane %v111_v20, 4  ;;  %v1345_v26 = vrot.slane %v111_v20, 5  ;;  %v119_v34 = vrot.slane %v117_v22, 5  ;;  %v124_v37 = vrot.slane %v122_v30, 4  ;;  %v57_v41 = vld [vmem:[%s5044_s0 + $0x18] sm:$0xf]  ;;  %p3741_p3 = scmp.lt.s32.totalorder %s3013_s13, %s3013_s13 }
  0x31   :  { %3066 = vmatmul.mubr.msk.bf16.vlgmr.msra.gmra.mrb[0].mxu0 %vm345_vm2, %v3844_v13  ;;  %v105_v32 = vrot.slane %v104_v24, 4  ;;  %v127_v38 = vrot.slane %v125_v31, 5  ;;  %v135_v40 = vshrl.u32 %v3860_v28, 16  ;;  %v3886_v44 = vcombine.low %v55_v23, %v3860_v28  ;;  %v3896_v49 = vld [vmem:[%s5044_s0 + $0x1c] sm:$0xf]  ;;  %s3736_s14 = scalar_lea.vmem %s3013_s13, 128 }
  0x32   :  { %v114_v33 = vor.u32 %v113_v25, %v109_v21  ;;  %v3870_v35 = vor.u32 %v1346_v27, %v1345_v26  ;;  %1059 = vmatpush1.bf16.msra.mxu0 %v3629_v14  ;;  %718 = vmatprep.mubr.bf16.mxu0 %v3770_v0  ;;  %v133_v46 = vrot.slane %v131_v39, 5  ;;  %v141_v48 = vshll.u32 %v3876_v36, 16  ;;  %v3903_v53 = vld [vmem:[%s5044_s0 + $0x20] sm:$0x1]  ;;  %v59_v54 = vld [vmem:[%s5044_s0 + $0x24] sm:$0xf]  ;;  %p3737_p2 = scmp.ne.s32.totalorder %s3013_s13, %s3736_s14  ;;  %p3742_p4 = scmp.lt.s32.totalorder %s3736_s14, %s3736_s14 }
  0x33   :  { %v110_v42 = vsel %vm3866_vm3, %v105_v32, %v109_v21  ;;  %v128_v45 = vor.u32 %v127_v38, %v124_v37  ;;  %v137_v47 = vrot.slane %v135_v40, 4  ;;  %v146_v51 = vshrl.u32 %v57_v41, 16  ;;  %v3636_v59 = vld [vmem:[#allocation2 + $0x78] ss:$12 sps:$4 sm:$0xff]   ;;  %v3638_v1 = vld [vmem:[#allocation2 + $0x7c] ss:$12 sps:$4 sm:$0xff]  }
  0x34   :  { %v115_v43 = vrot.slane %v114_v33, 4  ;;  %v149_v52 = vshll.u32 %v57_v41, 16  ;;  %v143_v58 = vrot.slane %v141_v48, 5  ;;  %v155_v62 = vshll.u32 %v3896_v49, 16  ;;  %v3928_v9 = vld [vmem:[%s5044_s0 + $0x28] sm:$0xf]  ;;  %1060 = vmatprep.subr.bf16.mxu0 %v3638_v1  ;;  %p3743_p5 = por %p3742_p4, %p3741_p3 }
  0x35   :  { %v129_v56 = vrot.slane %v128_v45, 4  ;;  %v138_v57 = vor.u32 %v137_v47, %v133_v46  ;;  %v148_v60 = vrot.slane %v146_v51, 4  ;;  %v159_v63 = vshrl.u32 %v3896_v49, 16  ;;  %v3940_v21 = vld [vmem:[%s5044_s0 + $0x2c] sm:$0x1] }
  0x36   :  { %v120_v50 = vsel %vm3866_vm3, %v115_v43, %v119_v34  ;;  %v151_v61 = vrot.slane %v149_v52, 5  ;;  %v165_v4 = vshll.u32 %v3903_v53, 16  ;;  %v170_v5 = vshrl.u32 %v59_v54, 16  ;;  %1061 = vmatpush1.bf16.msra.mxu0 %v3636_v59  ;;  %v61_v26 = vld [vmem:[%s5044_s0 + $0x30] sm:$0xf]  ;;  %p3744_p6 = pnand %p3743_p5, %p3737_p2 }
  0x37   :  { %v3908_v55 = vcombine.low %v110_v42, %v120_v50  ;;  %v134_v2 = vsel %vm3866_vm3, %v129_v56, %v133_v46  ;;  %v139_v3 = vrot.slane %v138_v57, 4  ;;  %v157_v7 = vrot.slane %v155_v62, 5  ;;  %v3954_v31 = vld [vmem:[%s5044_s0 + $0x34] sm:$0xf]  ;;  %v3643_v47 = vld [vmem:[#allocation2 + $0x50] ss:$12 sps:$4 sm:$0xff]  }
  0x38   :  { %v152_v6 = vor.u32 %v151_v61, %v148_v60  ;;  %v161_v8 = vrot.slane %v159_v63, 4  ;;  %v173_v11 = vshll.u32 %v59_v54, 16  ;;  %v3935_v15 = vcombine.low %v57_v41, %v3896_v49  ;;  %v3642_v41 = vld [vmem:[#allocation2 + $0x38] ss:$12 sps:$4 sm:$0xff]   ;;  %v63_v50 = vld [vmem:[%s5044_s0 + $0x3c] sm:$0xf] }
  0x39   :  { %3036 = vmatmul.mubr.msk.bf16.vlgmr.msra.gmra.mrb[0].mxu1 %vm345_vm2, %v3908_v55  ;;  %3067 = vmatmul.mubr.msk.bf16.gmra.mrb[4].mxu0 %vm345_vm2, %v3886_v44  ;;  %v144_v12 = vsel %vm3866_vm3, %v139_v3, %v143_v58  ;;  %v172_v17 = vrot.slane %v170_v5, 4  ;;  %v179_v22 = vshll.u32 %v3928_v9, 16  ;;  %v183_v23 = vshrl.u32 %v3928_v9, 16  ;;  %v3646_v58 = vld [vmem:[#allocation2 + $0x94] ss:$12 sps:$4 sm:$0xff]  }
  0x3a   :  { %412 = vmatprep.mubr.bf16.mxu1 %v3770_v0  ;;  %728 = vmatprep.mubr.bf16.mxu0 %v3770_v0  ;;  %v3932_v14 = vcombine.low %v134_v2, %v144_v12  ;;  %v162_v16 = vor.u32 %v161_v8, %v157_v7  ;;  %v153_v18 = vrot.slane %v152_v6, 4  ;;  %v175_v20 = vrot.slane %v173_v11, 5  ;;  %v3980_v61 = vld [vmem:[%s5044_s0 + $0x38] sm:$0x1]  ;;  %v3989_v2 = vld [vmem:[%s5044_s0 + $0x40] sm:$0xf] }
  0x3b   :  { %v167_v25 = vrot.slane %v165_v4, 5  ;;  %v181_v27 = vrot.slane %v179_v22, 5  ;;  %v185_v30 = vrot.slane %v183_v23, 4  ;;  %v189_v32 = vshll.u32 %v3940_v21, 16  ;;  %3294 = vmatprep.subr.bf16.mxu1 %v3642_v41  ;;  %1600 = vmatprep.subr.bf16.mxu0 %v3646_v58  ;;  %v3998_v8 = vld [vmem:[#allocation2 + $0x8] ss:$12 sps:$4 sm:$0xff]  }
  0x3c   :  { %v163_v24 = vrot.slane %v162_v16, 4  ;;  %v158_v33 = vsel %vm3866_vm3, %v153_v18, %v157_v7  ;;  %v176_v34 = vor.u32 %v175_v20, %v172_v17  ;;  %v194_v37 = vshrl.u32 %v61_v26, 16  ;;  %3295 = vmatpush3.bf16.msra.mxu1 %v3642_v41  ;;  %v3644_v29 = vld [vmem:[#allocation2 + $0x90] ss:$12 sps:$4 sm:$0xff]  }
  0x3d   :  { %v197_v38 = vshll.u32 %v61_v26, 16  ;;  %v186_v43 = vor.u32 %v185_v30, %v181_v27  ;;  %v203_v45 = vshll.u32 %v3954_v31, 16  ;;  %v207_v46 = vshrl.u32 %v3954_v31, 16  ;;  %3296 = vmatprep.subr.bf16.mxu1 %v3643_v47  ;;  %v4015_v30 = vld [vmem:[%s5044_s0 + $0x44] sm:$0x1] }
  0x3e   :  { %v168_v42 = vsel %vm3866_vm3, %v163_v24, %v167_v25  ;;  %v3970_v48 = vcombine.low %v59_v54, %v3928_v9  ;;  %v177_v52 = vrot.slane %v176_v34, 4  ;;  %v196_v56 = vrot.slane %v194_v37, 4 }
  0x3f   :  { %v3975_v51 = vcombine.low %v158_v33, %v168_v42  ;;  %v199_v57 = vrot.slane %v197_v38, 5  ;;  %v187_v59 = vrot.slane %v186_v43, 4  ;;  %v191_v60 = vrot.slane %v189_v32, 5  ;;  %v65_v38 = vld [vmem:[%s5044_s0 + $0x48] sm:$0xf] }
  0x40   :  { %v205_v54 = vrot.slane %v203_v45, 5  ;;  %v209_v1 = vrot.slane %v207_v46, 4  ;;  %v218_v3 = vshrl.u32 %v63_v50, 16  ;;  %v221_v4 = vshll.u32 %v63_v50, 16  ;;  %3297 = vmatpush3.bf16.msra.mxu1 %v3643_v47 }
  0x41   :  { %3037 = vmatmul.mubr.msk.bf16.gmra.mrb[4].mxu1 %vm345_vm2, %v3932_v14  ;;  %3068 = vmatmul.mubr.msk.bf16.gmra.mrb[8].mxu0 %vm345_vm2, %v3935_v15  ;;  %v182_v5 = vsel %vm3866_vm3, %v177_v52, %v181_v27  ;;  %v200_v6 = vor.u32 %v199_v57, %v196_v56  ;;  %v213_v7 = vshll.u32 %v3980_v61, 16  ;;  %v192_v11 = vsel %vm3866_vm3, %v187_v59, %v191_v60 }
  0x42   :  { %422 = vmatprep.mubr.bf16.mxu1 %v3770_v0  ;;  %738 = vmatprep.mubr.bf16.mxu0 %v3770_v0  ;;  %v210_v12 = vor.u32 %v209_v1, %v205_v54  ;;  %v227_v16 = vshll.u32 %v3989_v2, 16  ;;  %v231_v17 = vshrl.u32 %v3989_v2, 16  ;;  %v220_v18 = vrot.slane %v218_v3, 4 }
  0x43   :  { %3314 = vmatprep.subr.bf16.mxu1 %v3998_v8  ;;  %v223_v20 = vrot.slane %v221_v4, 5  ;;  %v4007_v24 = vcombine.low %v182_v5, %v192_v11  ;;  %v4010_v25 = vcombine.low %v61_v26, %v3954_v31  ;;  %v201_v27 = vrot.slane %v200_v6, 4  ;;  %v4027_v26 = vld [vmem:[%s5044_s0 + $0x4c] sm:$0xf]  ;;  %v4050_v5 = vld [vmem:[%s5044_s0 + $0x50] sm:$0x1] }
  0x44   :  { %v211_v32 = vrot.slane %v210_v12, 4  ;;  %v215_v33 = vrot.slane %v213_v7, 5  ;;  %v229_v34 = vrot.slane %v227_v16, 5  ;;  %v233_v37 = vrot.slane %v231_v17, 4 }
  0x45   :  { %v224_v41 = vor.u32 %v223_v20, %v220_v18  ;;  %v206_v42 = vsel %vm3866_vm3, %v201_v27, %v205_v54  ;;  %v237_v43 = vshll.u32 %v4015_v30, 16  ;;  %v242_v47 = vshrl.u32 %v65_v38, 16  ;;  %v4062_v18 = vld [vmem:[%s5044_s0 + $0x58] sm:$0xf] }
  0x46   :  { %v245_v52 = vshll.u32 %v65_v38, 16  ;;  %v216_v56 = vsel %vm3866_vm3, %v211_v32, %v215_v33  ;;  %v234_v57 = vor.u32 %v233_v37, %v229_v34  ;;  %v5053_v58 = vshll.u32 %v4027_v26, 16 }
  0x47   :  { %v255_v59 = vshrl.u32 %v4027_v26, 16  ;;  %v225_v60 = vrot.slane %v224_v41, 4  ;;  %v4042_v1 = vcombine.low %v206_v42, %v216_v56  ;;  %v4045_v54 = vcombine.low %v63_v50, %v3989_v2  ;;  %v67_v50 = vld [vmem:[%s5044_s0 + $0x54] sm:$0xf] }
  0x48   :  { %v244_v3 = vrot.slane %v242_v47, 4  ;;  %v247_v4 = vrot.slane %v245_v52, 5  ;;  %v235_v6 = vrot.slane %v234_v57, 4  ;;  %v239_v7 = vrot.slane %v237_v43, 5 }
  0x49   :  { %3038 = vmatmul.mubr.msk.bf16.gmra.mrb[8].mxu1 %vm345_vm2, %v3975_v51  ;;  %3069 = vmatmul.mubr.msk.bf16.gmra.mrb[12].mxu0 %vm345_vm2, %v3970_v48  ;;  %v253_v11 = vrot.slane %v5053_v58, 5  ;;  %v257_v12 = vrot.slane %v255_v59, 4  ;;  %v230_v20 = vsel %vm3866_vm3, %v225_v60, %v229_v34  ;;  %v261_v32 = vshll.u32 %v4050_v5, 16 }
  0x4a   :  { %432 = vmatprep.mubr.bf16.mxu1 %v3770_v0  ;;  %748 = vmatprep.mubr.bf16.mxu0 %v3770_v0  ;;  %v248_v27 = vor.u32 %v247_v4, %v244_v3  ;;  %v266_v33 = vshrl.u32 %v67_v50, 16  ;;  %v269_v37 = vshll.u32 %v67_v50, 16  ;;  %v240_v41 = vsel %vm3866_vm3, %v235_v6, %v239_v7 }
  0x4b   :  { %v258_v42 = vor.u32 %v257_v12, %v253_v11  ;;  %v5051_v34 = vshll.u32 %v4062_v18, 16  ;;  %v5052_v43 = vshrl.u32 %v4062_v18, 16  ;;  %v4078_v47 = vcombine.low %v65_v38, %v4027_v26  ;;  %v4089_v12 = vld [vmem:[%s5044_s0 + $0x5c] sm:$0x1] }
  0x4c   :  { %v4080_v52 = vcombine.low %v230_v20, %v240_v41  ;;  %v249_v56 = vrot.slane %v248_v27, 4  ;;  %v263_v57 = vrot.slane %v261_v32, 5  ;;  %v268_v60 = vrot.slane %v266_v33, 4  ;;  %v4106_v41 = vld [vmem:[%s5044_s0] sm:$0xe] }
  0x4d   :  { %v259_v3 = vrot.slane %v258_v42, 4  ;;  %v271_v4 = vrot.slane %v269_v37, 5  ;;  %v277_v6 = vrot.slane %v5051_v34, 5  ;;  %v281_v7 = vrot.slane %v5052_v43, 4 }
  0x4e   :  { %v924_v38 = vrot.slane %v3841_v10, 5  ;;  %v254_v20 = vsel %vm3866_vm3, %v249_v56, %v253_v11  ;;  %v285_v37 = vshll.u32 %v4089_v12, 16  ;;  %vm919_vm4 = vcmask 1042432  }
  0x4f   :  { %v264_v27 = vsel %vm3866_vm3, %v259_v3, %v263_v57  ;;  %v272_v32 = vor.u32 %v271_v4, %v268_v60  ;;  %v282_v33 = vor.u32 %v281_v7, %v277_v6  ;;  %vm920_vm5 = vcmask 1046532  }
  0x50   :  { %v1368_v11 = vrot.slane %v135_v40, 5  ;;  %v926_v42 = vrot.slane %v924_v38, 4  ;;  %v1369_v56 = vrot.slane %v131_v39, 6  ;;  %v927_v57 = vrot.slane %v3850_v19, 5  ;;  %vm4119_vm6 = vmor %vm919_vm4, %vm920_vm5 }
  0x51   :  { %3039 = vmatmul.mubr.msk.bf16.gmra.mrb[12].mxu1 %vm345_vm2, %v4007_v24  ;;  %3070 = vmatmul.mubr.msk.bf16.gmra.mrb[16].mxu0 %vm345_vm2, %v4010_v25  ;;  %v4113_v60 = vcombine.low %v254_v20, %v264_v27  ;;  %v4116_v3 = vcombine.low %v67_v50, %v4062_v18  ;;  %v3082_v4 = vrot.slane %v4106_v41, 9  ;;  %v273_v7 = vrot.slane %v272_v32, 4  ;;  %v4146_v32 = vld [vmem:[%s5044_s0 + $0xc] sm:$0xe] }
  0x52   :  { %442 = vmatprep.mubr.bf16.mxu1 %v3770_v0  ;;  %758 = vmatprep.mubr.bf16.mxu0 %v3770_v0  ;;  %v283_v34 = vrot.slane %v282_v33, 4  ;;  %v287_v43 = vrot.slane %v285_v37, 5  ;;  %v4123_v40 = vor.u32 %v1369_v56, %v1368_v11  ;;  %v1391_v39 = vrot.slane %v159_v63, 5  ;;  %v3651_v56 = vld [vmem:[#allocation2 + $0xac] ss:$12 sps:$4 sm:$0xff]  }
  0x53   :  { %v928_v19 = vsel %vm4119_vm6, %v926_v42, %v927_v57  ;;  %v1392_v50 = vrot.slane %v155_v62, 6  ;;  %v278_v20 = vsel %vm3866_vm3, %v273_v7, %v277_v6  ;;  %v925_v27 = vsel %vm4119_vm6, %v3082_v4, %v924_v38 }
  0x54   :  { %v288_v63 = vsel %vm3866_vm3, %v283_v34, %v287_v43  ;;  %v931_v62 = vrot.slane %v3860_v28, 5  ;;  %v4153_v6 = vcombine.low %v925_v27, %v928_v19  ;;  %v3083_v34 = vrot.slane %v4146_v32, 9  ;;  %v4182_v19 = vld [vmem:[%s5044_s0 + $0x18] sm:$0xe] }
  0x55   :  { %v4149_v33 = vor.u32 %v1392_v50, %v1391_v39  ;;  %v4151_v37 = vcombine.low %v278_v20, %v288_v63  ;;  %v1414_v43 = vrot.slane %v183_v23, 5  ;;  %v934_v11 = vrot.slane %v3876_v36, 5  ;;  %v3649_v23 = vld [vmem:[#allocation2 + $0xa8] ss:$12 sps:$4 sm:$0xff]  }
  0x56   :  { %v933_v38 = vrot.slane %v931_v62, 4  ;;  %v1415_v42 = vrot.slane %v179_v22, 6  ;;  %v932_v4 = vsel %vm4119_vm6, %v3083_v34, %v931_v62  ;;  %v938_v22 = vrot.slane %v3896_v49, 5  ;;  %v3648_v62 = vld [vmem:[#allocation2 + $0x20] ss:$12 sps:$4 sm:$0xff]  }
  0x57   :  { %v1437_v7 = vrot.slane %v207_v46, 5  ;;  %v1438_v39 = vrot.slane %v203_v45, 6  ;;  %v3084_v49 = vrot.slane %v4182_v19, 9  ;;  %v941_v46 = vrot.slane %v3903_v53, 5 }
  0x58   :  { %v4161_v57 = vor.u32 %v1415_v42, %v1414_v43  ;;  %v935_v36 = vsel %vm4119_vm6, %v933_v38, %v934_v11  ;;  %v940_v63 = vrot.slane %v938_v22, 4  ;;  %v1460_v45 = vrot.slane %v231_v17, 5  ;;  %v4220_v38 = vld [vmem:[#allocation2 + $0x68] ss:$12 sps:$4 sm:$0xff]  }
  0x59   :  { %3040 = vmatmul.mubr.msk.bf16.gmra.mrb[16].mxu1 %vm345_vm2, %v4042_v1  ;;  %3071 = vmatmul.mubr.msk.bf16.gmra.mrb[20].mxu0 %vm345_vm2, %v4045_v54  ;;  %v4184_v50 = vor.u32 %v1438_v39, %v1437_v7  ;;  %v4186_v20 = vcombine.low %v932_v4, %v935_v36  ;;  %v1461_v27 = vrot.slane %v227_v16, 6  ;;  %v1483_v53 = vrot.slane %v255_v59, 5  ;;  %v4215_v59 = vld [vmem:[%s5044_s0 + $0x24] sm:$0xe]  ;;  %v4238_v7 = vld [vmem:[%s5044_s0 + $0x30] sm:$0xe] }
  0x5a   :  { %452 = vmatprep.mubr.bf16.mxu1 %v3770_v0  ;;  %768 = vmatprep.mubr.bf16.mxu0 %v3770_v0  ;;  %v1896_v34 = vrot.slane %v3841_v10, 6  ;;  %v939_v16 = vsel %vm4119_vm6, %v3084_v49, %v938_v22  ;;  %v945_v17 = vrot.slane %v3928_v9, 5  ;;  %v1903_v43 = vrot.slane %v3860_v28, 6  ;;  %v1858_v49 = vld [vmem:[%s5044_s0] sm:$0xc] }
  0x5b   :  { %v5061_v10 = vshll.u32 %v4027_v26, 16  ;;  %v3085_v9 = vrot.slane %v4215_v59, 9  ;;  %v5062_v4 = vshrl.u32 %v4062_v18, 16  ;;  %v5063_v39 = vshll.u32 %v4062_v18, 16 }
  0x5c   :  { %v947_v28 = vrot.slane %v945_v17, 4  ;;  %v1898_v22 = vrot.slane %v1896_v34, 4  ;;  %vm1891_vm7 = vcmask 1041408   ;;  %vm1892_vm8 = vcmask 1045508  }
  0x5d   :  { %v1506_v36 = vrot.slane %v5062_v4, 5  ;;  %vm4269_vm9 = vmor %vm1891_vm7, %vm1892_vm8  ;;  %vm1333_vm10 = vsmask.f32 2304  ;;  %vm1334_vm11 = vsmask.f32 6416  ;;  %vm2727_vm13 = vcmask 1041409  }
  0x5e   :  { %vm4379_vm12 = vmor %vm1333_vm10, %vm1334_vm11  ;;  %vm2730_vm14 = vcmask 1042434   ;;  %vm2733_vm15 = vcmask 1043459   ;;  %vm2736_vm0 = vcmask 1044484   ;;  %vm2739_vm1 = vcmask 1045509  }
  0x5f   :  { %vm2745_vm3 = vcmask 1047559   ;;  %vm3772_vm4 = vmmov 0  }
  0x61   :  { %3041 = vmatmul.mubr.msk.bf16.gmra.mrb[20].mxu1 %vm345_vm2, %v4080_v52  ;;  %3072 = vmatmul.mubr.msk.bf16.gmra.mrb[24].mxu0 %vm345_vm2, %v4078_v47 }
  0x62   :  { %462 = vmatprep.mubr.bf16.mxu1 %v3770_v0  ;;  %778 = vmatprep.mubr.bf16.mxu0 %v3770_v0 }
  0x69   :  { %3042 = vmatmul.mubr.msk.bf16.gmra.mrb[24].mxu1 %vm345_vm2, %v4113_v60  ;;  %3073 = vmatmul.mubr.msk.bf16.gmra.mrb[28].mxu0 %vm345_vm2, %v4116_v3 }
  0x6a   :  { %472 = vmatprep.mubr.bf16.mxu1 %v3770_v0  ;;  %1090 = vmatprep.mubr.bf16.mxu0 %v3770_v0 }
  0x71   :  { %3043 = vmatmul.mubr.msk.bf16.gmra.mrb[28].mxu1 %vm345_vm2, %v4151_v37  ;;  %3104 = vmatmul.mubr.msk.bf16.vlgmr.msra.gmra.mrb[0].mxu0 %vm345_vm2, %v4153_v6 }
  0x72   :  { %3298 = vmatprep.mubr.msk.bf16.mxu1 %vm345_vm2, %v3908_v55  ;;  %1601 = vmatpush1.bf16.msra.mxu0 %v3644_v29  ;;  %v3656_v55 = vld [vmem:[#allocation2 + $0xc4] ss:$12 sps:$4 sm:$0xff]   ;;  %v4198_v29 = vor.u32 %v1461_v27, %v1460_v45  ;;  %v952_v45 = vrot.slane %v3954_v31, 5  ;;  %v4265_v27 = vld [vmem:[%s5044_s0 + $0x8] sm:$0x3]  ;;  %v3086_v31 = vrot.slane %v4238_v7, 9 }
  0x73   :  { %1100 = vmatprep.mubr.bf16.mxu0 %v3770_v0  ;;  %1602 = vmatprep.subr.bf16.mxu0 %v3651_v56  ;;  %v948_v56 = vrot.slane %v3940_v21, 5 }
  0x76   :  { %1603 = vmatpush1.bf16.msra.mxu0 %v3649_v23  ;;  %v4233_v23 = vld [vmem:[%s5044_s0 + $0x14] sm:$0x3] }
  0x77   :  { %2030 = vmatprep.subr.bf16.mxu0 %v3656_v55  ;;  %v1906_v21 = vrot.slane %v4233_v23, 6  ;;  %v1507_v55 = vrot.slane %v5063_v39, 6 }
  0x79   :  { %3299 = vmatmul.mubr.msk.bf16.vlgmr.msra.gmra.mrb[32].mxu1 %vm345_vm2, %v3932_v14  ;;  %3105 = vmatmul.mubr.msk.bf16.gmra.mrb[4].mxu0 %vm345_vm2, %v4186_v20  ;;  %v942_v14 = vsel %vm4119_vm6, %v940_v63, %v941_v46  ;;  %v1859_v63 = vld [vmem:[%s5044_s0 + $0xc] sm:$0xc]  ;;  %v946_v46 = vsel %vm4119_vm6, %v3085_v9, %v945_v17 }
  0x7a   :  { %3302 = vmatprep.mubr.msk.bf16.mxu1 %vm345_vm2, %v3975_v51  ;;  %1110 = vmatprep.mubr.bf16.mxu0 %v3770_v0  ;;  %v1484_v51 = vrot.slane %v5061_v10, 6  ;;  %v4222_v11 = vcombine.low %v939_v16, %v942_v14  ;;  %v1899_v16 = vrot.slane %v4265_v27, 6  ;;  %v3151_v14 = vrot.slane %v1859_v63, 10 }
  0x7b   :  { %3315 = vmatpush3.bf16.msra.mxu1 %v3998_v8  ;;  %v1905_v8 = vrot.slane %v1903_v43, 4 }
  0x7c   :  { %3316 = vmatprep.subr.bf16.mxu1 %v3648_v62  ;;  %v4224_v42 = vor.u32 %v1484_v51, %v1483_v53  ;;  %v1900_v9 = vsel %vm4269_vm9, %v1898_v22, %v1899_v16  ;;  %v1337_v16 = vshrl.u32 %v4106_v41, 16 }
  0x7d   :  { %v1907_v17 = vsel %vm4269_vm9, %v1905_v8, %v1906_v21  ;;  %v962_v21 = vrot.slane %v4015_v30, 5  ;;  %v4326_v30 = vld [vmem:[%s5044_s0 + $0x48] sm:$0xe] }
  0x7e   :  { %v3088_v63 = vrot.slane %v4326_v30, 9 }
  0x7f   :  { %3317 = vmatpush3.bf16.msra.mxu1 %v3648_v62  ;;  %v4267_v62 = vor.u32 %v1507_v55, %v1506_v36  ;;  %v1904_v36 = vsel %vm4269_vm9, %v3151_v14, %v1903_v43  ;;  %v959_v43 = vrot.slane %v3989_v2, 5  ;;  %v1340_v14 = vshll.u32 %v4106_v41, 16 }
  0x80   :  { %3334 = vmatprep.subr.bf16.mxu1 %v4220_v38  ;;  %v4288_v39 = vcombine.low %v1904_v36, %v1907_v17  ;;  %v1351_v36 = vshrl.u32 %v4265_v27, 16 }
  0x81   :  { %3303 = vmatmul.mubr.msk.bf16.gmra.mrb[36].mxu1 %vm345_vm2, %v4007_v24  ;;  %3106 = vmatmul.mubr.msk.bf16.gmra.mrb[8].mxu0 %vm345_vm2, %v4222_v11  ;;  %v949_v24 = vsel %vm4119_vm6, %v947_v28, %v948_v56  ;;  %v954_v28 = vrot.slane %v952_v45, 4  ;;  %v955_v56 = vrot.slane %v3980_v61, 5  ;;  %v953_v61 = vsel %vm4119_vm6, %v3086_v31, %v952_v45 }
  0x82   :  { %3306 = vmatprep.mubr.msk.bf16.mxu1 %vm345_vm2, %v4042_v1  ;;  %1120 = vmatprep.mubr.bf16.mxu0 %v3770_v0  ;;  %v3150_v1 = vrot.slane %v1858_v49, 10  ;;  %v4276_v10 = vcombine.low %v946_v46, %v949_v24  ;;  %v966_v49 = vrot.slane %v4027_v26, 5  ;;  %v969_v46 = vrot.slane %v4050_v5, 5  ;;  %v3653_v24 = vld [vmem:[#allocation2 + $0x80] ss:$12 sps:$4 sm:$0xff]  }
  0x83   :  { %v973_v45 = vrot.slane %v4062_v18, 5 }
  0x84   :  { %v1897_v51 = vsel %vm4269_vm9, %v3150_v1, %v1896_v34  ;;  %v956_v34 = vsel %vm4119_vm6, %v954_v28, %v955_v56  ;;  %v967_v1 = vsel %vm4119_vm6, %v3088_v63, %v966_v49  ;;  %v1339_v28 = vrot.slane %v1337_v16, 5 }
  0x85   :  { %v4284_v4 = vcombine.low %v1897_v51, %v1900_v9  ;;  %v4307_v22 = vcombine.low %v953_v61, %v956_v34  ;;  %v975_v51 = vrot.slane %v973_v45, 4  ;;  %v976_v9 = vrot.slane %v4089_v12, 5 }
  0x86   :  { %v1342_v56 = vrot.slane %v1340_v14, 6  ;;  %v1354_v61 = vshll.u32 %v4265_v27, 16  ;;  %v1353_v34 = vrot.slane %v1351_v36, 5  ;;  %v3654_v14 = vld [vmem:[#allocation2 + $0xc0] ss:$12 sps:$4 sm:$0xff]   ;;  %v1406_v36 = vshrl.u32 %v4215_v59, 16 }
  0x87   :  { %v977_v12 = vsel %vm4119_vm6, %v975_v51, %v976_v9 }
  0x88   :  { %v1343_v27 = vor.u32 %v1342_v56, %v1339_v28  ;;  %v3661_v28 = vld [vmem:[#allocation2 + $0xdc] ss:$12 sps:$4 sm:$0xff]  }
  0x89   :  { %3307 = vmatmul.mubr.msk.bf16.gmra.mrb[40].mxu1 %vm345_vm2, %v4080_v52  ;;  %3107 = vmatmul.mubr.msk.bf16.gmra.mrb[12].mxu0 %vm345_vm2, %v4276_v10  ;;  %v4305_v52 = vld [vmem:[%s5044_s0 + $0x3c] sm:$0xe] }
  0x8a   :  { %3310 = vmatprep.mubr.msk.bf16.mxu1 %vm345_vm2, %v4113_v60  ;;  %1130 = vmatprep.mubr.bf16.mxu0 %v3770_v0  ;;  %v3087_v8 = vrot.slane %v4305_v52, 9  ;;  %v961_v60 = vrot.slane %v959_v43, 4 }
  0x8c   :  { %v960_v2 = vsel %vm4119_vm6, %v3087_v8, %v959_v43  ;;  %v963_v55 = vsel %vm4119_vm6, %v961_v60, %v962_v21  ;;  %v1356_v43 = vrot.slane %v1354_v61, 6  ;;  %v1349_v8 = vrot.slane %v3870_v35, 4 }
  0x8d   :  { %v1374_v21 = vshrl.u32 %v4233_v23, 16  ;;  %v1409_v61 = vshll.u32 %v4215_v59, 16  ;;  %v4424_v59 = vld [vmem:[%s5044_s0 + $0x2c] sm:$0x3] }
  0x91   :  { %3311 = vmatmul.mubr.msk.bf16.gmra.mrb[44].mxu1 %vm345_vm2, %v4151_v37  ;;  %3108 = vmatmul.mubr.msk.bf16.gmra.mrb[16].mxu0 %vm345_vm2, %v4307_v22  ;;  %v4328_v37 = vcombine.low %v960_v2, %v963_v55  ;;  %v1344_v2 = vrot.slane %v1343_v27, 4  ;;  %v1357_v55 = vor.u32 %v1356_v43, %v1353_v34  ;;  %v3659_v27 = vld [vmem:[#allocation2 + $0xd8] ss:$12 sps:$4 sm:$0xff]   ;;  %v1408_v43 = vrot.slane %v1406_v36, 5 }
  0x92   :  { %3318 = vmatprep.mubr.msk.bf16.mxu1 %vm345_vm2, %v3844_v13  ;;  %1140 = vmatprep.mubr.bf16.mxu0 %v3770_v0  ;;  %v968_v13 = vrot.slane %v966_v49, 4 }
  0x94   :  { %v970_v5 = vsel %vm4119_vm6, %v968_v13, %v969_v46  ;;  %v1383_v13 = vshrl.u32 %v4182_v19, 16  ;;  %v1386_v46 = vshll.u32 %v4182_v19, 16 }
  0x95   :  { %v4354_v17 = vcombine.low %v967_v1, %v970_v5  ;;  %v4400_v1 = vld [vmem:[%s5044_s0 + $0x20] sm:$0x3] }
  0x96   :  { %v1385_v5 = vrot.slane %v1383_v13, 5  ;;  %v1388_v16 = vrot.slane %v1386_v46, 6  ;;  %v1400_v9 = vshll.u32 %v4400_v1, 16 }
  0x98   :  { %v1389_v56 = vor.u32 %v1388_v16, %v1385_v5 }
  0x99   :  { %3319 = vmatmul.mubr.msk.bf16.vlgmr.msra.gmra.mrb[32].mxu1 %vm345_vm2, %v3886_v44  ;;  %3109 = vmatmul.mubr.msk.bf16.gmra.mrb[20].mxu0 %vm345_vm2, %v4328_v37  ;;  %v4347_v44 = vld [vmem:[%s5044_s0 + $0x54] sm:$0xe] }
  0x9a   :  { %3322 = vmatprep.mubr.msk.bf16.mxu1 %vm345_vm2, %v3935_v15  ;;  %1150 = vmatprep.mubr.bf16.mxu0 %v3770_v0  ;;  %v4352_v15 = vld [vmem:[#allocation2 + $0x98] ss:$12 sps:$4 sm:$0xff]   ;;  %v3089_v31 = vrot.slane %v4347_v44, 9  ;;  %v1390_v34 = vrot.slane %v1389_v56, 4 }
  0x9b   :  { %3335 = vmatpush3.bf16.msra.mxu1 %v4220_v38  ;;  %v1360_v38 = vshrl.u32 %v4146_v32, 16 }
  0x9c   :  { %3336 = vmatprep.subr.bf16.mxu1 %v3653_v24  ;;  %v974_v41 = vsel %vm4119_vm6, %v3089_v31, %v973_v45 }
  0x9d   :  { %v4375_v60 = vcombine.low %v974_v41, %v977_v12  ;;  %v1362_v58 = vrot.slane %v1360_v38, 5  ;;  %v1402_v38 = vrot.slane %v1400_v9, 6 }
  0x9f   :  { %3337 = vmatpush3.bf16.msra.mxu1 %v3653_v24 }
  0xa0   :  { %3354 = vmatprep.subr.bf16.mxu1 %v4352_v15 }
  0xa1   :  { %3323 = vmatmul.mubr.msk.bf16.gmra.mrb[36].mxu1 %vm345_vm2, %v3970_v48  ;;  %3110 = vmatmul.mubr.msk.bf16.gmra.mrb[24].mxu0 %vm345_vm2, %v4354_v17  ;;  %v1363_v48 = vshll.u32 %v4146_v32, 16  ;;  %v1376_v32 = vrot.slane %v1374_v21, 5  ;;  %v1423_v21 = vshll.u32 %v4424_v59, 16 }
  0xa2   :  { %3326 = vmatprep.mubr.msk.bf16.mxu1 %vm345_vm2, %v4010_v25  ;;  %1160 = vmatprep.mubr.bf16.mxu0 %v3770_v0  ;;  %v1377_v25 = vshll.u32 %v4233_v23, 16  ;;  %v1348_v23 = vsel %vm4379_vm12, %v1344_v2, %v3870_v35  ;;  %v1397_v35 = vshrl.u32 %v4400_v1, 16  ;;  %v3658_v2 = vld [vmem:[#allocation2 + $0xb0] ss:$12 sps:$4 sm:$0xff]  }
  0xa3   :  { %v1365_v49 = vrot.slane %v1363_v48, 6  ;;  %v1411_v48 = vrot.slane %v1409_v61, 6  ;;  %v1425_v46 = vrot.slane %v1423_v21, 6  ;;  %v1441_v61 = vrot.slane %v4184_v50, 4 }
  0xa4   :  { %v1379_v45 = vrot.slane %v1377_v25, 6  ;;  %v1432_v25 = vshll.u32 %v4238_v7, 16  ;;  %v1464_v21 = vrot.slane %v4198_v29, 4 }
  0xa5   :  { %v1366_v24 = vor.u32 %v1365_v49, %v1362_v58  ;;  %v1420_v58 = vshrl.u32 %v4424_v59, 16  ;;  %v1429_v49 = vshrl.u32 %v4238_v7, 16  ;;  %v4449_v7 = vld [vmem:[%s5044_s0 + $0x38] sm:$0x3] }
  0xa6   :  { %v1380_v51 = vor.u32 %v1379_v45, %v1376_v32  ;;  %v1394_v32 = vsel %vm4379_vm12, %v1390_v34, %v4149_v33  ;;  %v1418_v45 = vrot.slane %v4161_v57, 4  ;;  %v1443_v5 = vshrl.u32 %v4449_v7, 16 }
  0xa7   :  { %v1367_v31 = vrot.slane %v1366_v24, 4  ;;  %v1422_v13 = vrot.slane %v1420_v58, 5  ;;  %v1431_v24 = vrot.slane %v1429_v49, 5 }
  0xa9   :  { %3327 = vmatmul.mubr.msk.bf16.gmra.mrb[40].mxu1 %vm345_vm2, %v4045_v54  ;;  %3111 = vmatmul.mubr.msk.bf16.gmra.mrb[28].mxu0 %vm345_vm2, %v4375_v60  ;;  %v1358_v54 = vsel %vm4379_vm12, %v1349_v8, %v1357_v55  ;;  %v1371_v41 = vsel %vm4379_vm12, %v1367_v31, %v4123_v40  ;;  %v1412_v55 = vor.u32 %v1411_v48, %v1408_v43  ;;  %v1455_v31 = vshll.u32 %v4305_v52, 16 }
  0xaa   :  { %3330 = vmatprep.mubr.msk.bf16.mxu1 %vm345_vm2, %v4078_v47  ;;  %1632 = vmatprep.mubr.bf16.mxu0 %v3770_v0  ;;  %v4402_v19 = vcombine.low %v1348_v23, %v1358_v54  ;;  %v1372_v47 = vrot.slane %v4123_v40, 4  ;;  %v1395_v40 = vrot.slane %v4149_v33, 4  ;;  %v1434_v33 = vrot.slane %v1432_v25, 6 }
  0xab   :  { %v1413_v54 = vrot.slane %v1412_v55, 4  ;;  %v1457_v36 = vrot.slane %v1455_v31, 6 }
  0xac   :  { %v1381_v12 = vsel %vm4379_vm12, %v1372_v47, %v1380_v51  ;;  %v1426_v47 = vor.u32 %v1425_v46, %v1422_v13  ;;  %v1435_v16 = vor.u32 %v1434_v33, %v1431_v24  ;;  %v1487_v33 = vrot.slane %v4224_v42, 4 }
  0xad   :  { %v1417_v51 = vsel %vm4379_vm12, %v1413_v54, %v4161_v57  ;;  %v4521_v54 = vld [vmem:[%s5044_s0 + $0x5c] sm:$0x3] }
  0xae   :  { %v1436_v56 = vrot.slane %v1435_v16, 4  ;;  %v3663_v16 = vld [vmem:[#allocation2 + $0xe0] ss:$12 sps:$4 sm:$0xff]  }
  0xb0   :  { %v1440_v34 = vsel %vm4379_vm12, %v1436_v56, %v4184_v50 }
  0xb1   :  { %3331 = vmatmul.mubr.msk.bf16.gmra.mrb[44].mxu1 %vm345_vm2, %v4116_v3  ;;  %3134 = vmatmul.mubr.msk.bf16.vlgmr.msra.gmra.mrb[0].mxu0 %vm345_vm2, %v4402_v19  ;;  %v1399_v3 = vrot.slane %v1397_v35, 5  ;;  %v1445_v35 = vrot.slane %v1443_v5, 5  ;;  %v1512_v5 = vshrl.u32 %v4521_v54, 16 }
  0xb2   :  { %3338 = vmatprep.mubr.msk.bf16.mxu1 %vm345_vm2, %v4153_v6  ;;  %2031 = vmatpush1.bf16.msra.mxu0 %v3654_v14  ;;  %v4426_v6 = vcombine.low %v1371_v41, %v1381_v12  ;;  %v1452_v14 = vshrl.u32 %v4305_v52, 16 }
  0xb3   :  { %1642 = vmatprep.mubr.bf16.mxu0 %v3770_v0  ;;  %2032 = vmatprep.subr.bf16.mxu0 %v3661_v28  ;;  %v1403_v8 = vor.u32 %v1402_v38, %v1399_v3  ;;  %v4476_v28 = vld [vmem:[%s5044_s0 + $0x44] sm:$0x3]  ;;  %v1475_v38 = vshrl.u32 %v4326_v30, 16 }
  0xb4   :  { %v1466_v57 = vshrl.u32 %v4476_v28, 16  ;;  %v1469_v12 = vshll.u32 %v4476_v28, 16 }
  0xb5   :  { %v1477_v58 = vrot.slane %v1475_v38, 5 }
  0xb6   :  { %2033 = vmatpush1.bf16.msra.mxu0 %v3659_v27  ;;  %v1478_v27 = vshll.u32 %v4326_v30, 16  ;;  %v1468_v43 = vrot.slane %v1466_v57, 5  ;;  %v1471_v48 = vrot.slane %v1469_v12, 6 }
  0xb9   :  { %3339 = vmatmul.mubr.msk.bf16.vlgmr.msra.gmra.mrb[32].mxu1 %vm345_vm2, %v4186_v20  ;;  %3135 = vmatmul.mubr.msk.bf16.gmra.mrb[4].mxu0 %vm345_vm2, %v4426_v6  ;;  %v1404_v20 = vsel %vm4379_vm12, %v1395_v40, %v1403_v8  ;;  %v4500_v40 = vld [vmem:[%s5044_s0 + $0x50] sm:$0x3] }
  0xba   :  { %3342 = vmatprep.mubr.msk.bf16.mxu1 %vm345_vm2, %v4222_v11  ;;  %1652 = vmatprep.mubr.bf16.mxu0 %v3770_v0  ;;  %v4451_v11 = vld [vmem:[#allocation2 + $0xc8] ss:$12 sps:$4 sm:$0xff]   ;;  %v4453_v23 = vcombine.low %v1394_v32, %v1404_v20  ;;  %v1489_v55 = vshrl.u32 %v4500_v40, 16  ;;  %v1492_v50 = vshll.u32 %v4500_v40, 16  ;;  %v1498_v32 = vshrl.u32 %v4347_v44, 16 }
  0xbb   :  { %3355 = vmatpush3.bf16.msra.mxu1 %v4352_v15  ;;  %v1446_v15 = vshll.u32 %v4449_v7, 16 }
  0xbc   :  { %3356 = vmatprep.subr.bf16.mxu1 %v3658_v2  ;;  %v1491_v13 = vrot.slane %v1489_v55, 5  ;;  %v1494_v46 = vrot.slane %v1492_v50, 6  ;;  %v1863_v55 = vld [vmem:[%s5044_s0 + $0x3c] sm:$0xc]  ;;  %v1938_v50 = vrot.slane %v4027_v26, 6 }
  0xbd   :  { %v1448_v9 = vrot.slane %v1446_v15, 6  ;;  %v1515_v15 = vshll.u32 %v4521_v54, 16 }
  0xbf   :  { %3357 = vmatpush3.bf16.msra.mxu1 %v3658_v2  ;;  %v1449_v41 = vor.u32 %v1448_v9, %v1445_v35  ;;  %v1472_v2 = vor.u32 %v1471_v48, %v1468_v43  ;;  %v1510_v9 = vrot.slane %v4267_v62, 4  ;;  %v1920_v48 = vrot.slane %v4424_v59, 6  ;;  %v3691_v59 = vld [vmem:[%s5044_s0 + $0x40] sm:$0xf] }
  0xc0   :  { %3374 = vmatprep.subr.bf16.mxu1 %v4451_v11 }
  0xc1   :  { %3343 = vmatmul.mubr.msk.bf16.gmra.mrb[36].mxu1 %vm345_vm2, %v4276_v10  ;;  %3136 = vmatmul.mubr.msk.bf16.gmra.mrb[8].mxu0 %vm345_vm2, %v4453_v23  ;;  %v1427_v10 = vsel %vm4379_vm12, %v1418_v45, %v1426_v47  ;;  %v1473_v20 = vsel %vm4379_vm12, %v1464_v21, %v1472_v2  ;;  %v1500_v45 = vrot.slane %v1498_v32, 5 }
  0xc2   :  { %3346 = vmatprep.mubr.msk.bf16.mxu1 %vm345_vm2, %v4307_v22  ;;  %1662 = vmatprep.mubr.bf16.mxu0 %v3770_v0  ;;  %v4478_v52 = vcombine.low %v1417_v51, %v1427_v10  ;;  %v1454_v22 = vrot.slane %v1452_v14, 5  ;;  %v1514_v51 = vrot.slane %v1512_v5, 5  ;;  %v1517_v10 = vrot.slane %v1515_v15, 6 }
  0xc4   :  { %v1458_v3 = vor.u32 %v1457_v36, %v1454_v22  ;;  %v1518_v56 = vor.u32 %v1517_v10, %v1514_v51 }
  0xc6   :  { %v1459_v8 = vrot.slane %v1458_v3, 4  ;;  %v1861_v3 = vld [vmem:[%s5044_s0 + $0x24] sm:$0xc] }
  0xc8   :  { %v1463_v49 = vsel %vm4379_vm12, %v1459_v8, %v4198_v29 }
  0xc9   :  { %3347 = vmatmul.mubr.msk.bf16.gmra.mrb[40].mxu1 %vm345_vm2, %v4328_v37  ;;  %3137 = vmatmul.mubr.msk.bf16.gmra.mrb[12].mxu0 %vm345_vm2, %v4478_v52  ;;  %v1450_v37 = vsel %vm4379_vm12, %v1441_v61, %v1449_v41  ;;  %v3125_v29 = vcombine.low %v1463_v49, %v1473_v20  ;;  %v1913_v61 = vrot.slane %v4400_v1, 6  ;;  %v3689_v41 = vld [vmem:[%s5044_s0 + $0x28] sm:$0xf]  ;;  %v3155_v20 = vrot.slane %v1863_v55, 10 }
  0xca   :  { %3350 = vmatprep.mubr.msk.bf16.mxu1 %vm345_vm2, %v4354_v17  ;;  %1672 = vmatprep.mubr.bf16.mxu0 %v3770_v0  ;;  %v3124_v30 = vcombine.low %v1440_v34, %v1450_v37  ;;  %v1480_v17 = vrot.slane %v1478_v27, 6  ;;  %v1917_v57 = vrot.slane %v3689_v41, 6  ;;  %v1862_v27 = vld [vmem:[%s5044_s0 + $0x30] sm:$0xc]  ;;  %v3153_v37 = vrot.slane %v1861_v3, 10  ;;  %v3671_v55 = vld [vmem:[#allocation5 + $0x18] sm:$0xff]  }
  0xcb   :  { %v1864_v49 = vld [vmem:[%s5044_s0 + $0x48] sm:$0xc] }
  0xcc   :  { %v1481_v25 = vor.u32 %v1480_v17, %v1477_v58  ;;  %v1919_v43 = vrot.slane %v1917_v57, 4  ;;  %v1927_v58 = vrot.slane %v4449_v7, 6  ;;  %v1918_v17 = vsel %vm4269_vm9, %v3153_v37, %v1917_v57 }
  0xcd   :  { %v1931_v7 = vrot.slane %v3691_v59, 6  ;;  %v3667_v59 = vld [vmem:[#allocation5 + $0x8] sm:$0xff]  }
  0xce   :  { %v1482_v24 = vrot.slane %v1481_v25, 4  ;;  %v1921_v21 = vsel %vm4269_vm9, %v1919_v43, %v1920_v48 }
  0xcf   :  { %v3161_v25 = vcombine.low %v1918_v17, %v1921_v21  ;;  %v1932_v26 = vsel %vm4269_vm9, %v3155_v20, %v1931_v7  ;;  %v3665_v17 = vld [vmem:[#allocation5] sm:$0xff]   ;;  %v3666_v21 = vld [vmem:[#allocation5 + $0x48] sm:$0xff]   ;;  %v3676_v20 = vld [vmem:[#allocation5 + $0x70] sm:$0xff]  }
  0xd1   :  { %3351 = vmatmul.mubr.msk.bf16.gmra.mrb[44].mxu1 %vm345_vm2, %v4375_v60  ;;  %3138 = vmatmul.mubr.msk.bf16.gmra.mrb[16].mxu0 %vm345_vm2, %v3124_v30  ;;  %v1501_v60 = vshll.u32 %v4347_v44, 16  ;;  %v1486_v44 = vsel %vm4379_vm12, %v1482_v24, %v4224_v42  ;;  %v1941_v24 = vrot.slane %v4500_v40, 6 }
  0xd2   :  { %3358 = vmatprep.mubr.msk.bf16.mxu1 %vm345_vm2, %v4402_v19  ;;  %1682 = vmatprep.mubr.bf16.mxu0 %v3770_v0  ;;  %v1495_v19 = vor.u32 %v1494_v46, %v1491_v13  ;;  %v1933_v13 = vrot.slane %v1931_v7, 4  ;;  %v1934_v46 = vrot.slane %v4476_v28, 6  ;;  %v1945_v28 = vrot.slane %v4062_v18, 6  ;;  %v3668_v7 = vld [vmem:[#allocation5 + $0x50] sm:$0xff]  }
  0xd3   :  { %v1503_v47 = vrot.slane %v1501_v60, 6  ;;  %v3156_v60 = vrot.slane %v1864_v49, 10  ;;  %v3673_v49 = vld [vmem:[#allocation5 + $0x20] sm:$0xff]  }
  0xd4   :  { %v1496_v14 = vsel %vm4379_vm12, %v1487_v33, %v1495_v19  ;;  %v1935_v33 = vsel %vm4269_vm9, %v1933_v13, %v1934_v46  ;;  %v1865_v19 = vld [vmem:[%s5044_s0 + $0x54] sm:$0xc]  ;;  %v3677_v13 = vld [vmem:[#allocation5 + $0x30] sm:$0xff]   ;;  %v3678_v46 = vld [vmem:[#allocation5 + $0x78] sm:$0xff]  }
  0xd5   :  { %v1504_v31 = vor.u32 %v1503_v47, %v1500_v45  ;;  %v1939_v45 = vsel %vm4269_vm9, %v3156_v60, %v1938_v50  ;;  %v3163_v47 = vcombine.low %v1932_v26, %v1935_v33  ;;  %v3157_v15 = vrot.slane %v1865_v19, 10  ;;  %v3679_v60 = vld [vmem:[#allocation5 + $0x38] sm:$0xff]  }
  0xd7   :  { %v1505_v35 = vrot.slane %v1504_v31, 4  ;;  %v1946_v18 = vsel %vm4269_vm9, %v3157_v15, %v1945_v28  ;;  %v4723_v15 = vld [vmem:[%s5047_s3 + $0x8] sm:$0xff] }
  0xd9   :  { %3359 = vmatmul.mubr.msk.bf16.vlgmr.msra.gmra.mrb[32].mxu1 %vm345_vm2, %v4426_v6  ;;  %3139 = vmatmul.mubr.msk.bf16.gmra.mrb[20].mxu0 %vm345_vm2, %v3125_v29  ;;  %v3126_v6 = vcombine.low %v1486_v44, %v1496_v14  ;;  %v1509_v42 = vsel %vm4379_vm12, %v1505_v35, %v4267_v62  ;;  %v1860_v62 = vld [vmem:[%s5044_s0 + $0x18] sm:$0xc]  ;;  %v1948_v44 = vrot.slane %v4521_v54, 6 }
  0xda   :  { %3362 = vmatprep.mubr.msk.bf16.mxu1 %vm345_vm2, %v4453_v23  ;;  %1692 = vmatprep.mubr.bf16.mxu0 %v3770_v0  ;;  %v3152_v63 = vrot.slane %v1860_v62, 10 }
  0xdb   :  { %3375 = vmatpush3.bf16.msra.mxu1 %v4451_v11  ;;  %v1519_v11 = vsel %vm4379_vm12, %v1510_v9, %v1518_v56 }
  0xdc   :  { %3376 = vmatprep.subr.bf16.mxu1 %v3663_v16  ;;  %v3127_v23 = vcombine.low %v1509_v42, %v1519_v11 }
  0xdf   :  { %3377 = vmatpush3.bf16.msra.mxu1 %v3663_v16  ;;  %v1947_v16 = vrot.slane %v1945_v28, 4 }
  0xe1   :  { %3363 = vmatmul.mubr.msk.bf16.gmra.mrb[36].mxu1 %vm345_vm2, %v4478_v52  ;;  %3140 = vmatmul.mubr.msk.bf16.gmra.mrb[24].mxu0 %vm345_vm2, %v3126_v6  ;;  %v3688_v52 = vld [vmem:[%s5044_s0 + $0x1c] sm:$0xf]  ;;  %v1949_v14 = vsel %vm4269_vm9, %v1947_v16, %v1948_v44 }
  0xe2   :  { %3366 = vmatprep.mubr.msk.bf16.mxu1 %vm345_vm2, %v3124_v30  ;;  %1702 = vmatprep.mubr.bf16.mxu0 %v3770_v0  ;;  %v1910_v22 = vrot.slane %v3688_v52, 6  ;;  %v3154_v30 = vrot.slane %v1862_v27, 10  ;;  %v3165_v51 = vcombine.low %v1946_v18, %v1949_v14  ;;  %v4729_v18 = vld [vmem:[%s5047_s3 + $0x20] sm:$0xff] }
  0xe4   :  { %v1912_v36 = vrot.slane %v1910_v22, 4  ;;  %v1911_v12 = vsel %vm4269_vm9, %v3152_v63, %v1910_v22 }
  0xe6   :  { %v1914_v1 = vsel %vm4269_vm9, %v1912_v36, %v1913_v61 }
  0xe7   :  { %v3160_v34 = vcombine.low %v1911_v12, %v1914_v1 }
  0xe9   :  { %3367 = vmatmul.mubr.msk.bf16.gmra.mrb[40].mxu1 %vm345_vm2, %v3125_v29  ;;  %3141 = vmatmul.mubr.msk.bf16.gmra.mrb[28].mxu0 %vm345_vm2, %v3127_v23  ;;  %v1940_v29 = vrot.slane %v1938_v50, 4  ;;  %v3672_v50 = vld [vmem:[#allocation5 + $0x60] sm:$0xff]  }
  0xea   :  { %3370 = vmatprep.mubr.msk.bf16.mxu1 %vm345_vm2, %v3126_v6  ;;  %2062 = vmatprep.mubr.bf16.mxu0 %v3770_v0 }
  0xeb   :  { %v1942_v40 = vsel %vm4269_vm9, %v1940_v29, %v1941_v24  ;;  %v5054_v29 = vmov 0.0   ;;  %v2536_v24 = vlaneseq }
  0xec   :  { %v3164_v5 = vcombine.low %v1939_v45, %v1942_v40  ;;  %v4712_v45 = vld [vmem:[%s5047_s3] sm:$0xff] }
  0xf1   :  { %3371 = vmatmul.mubr.msk.bf16.gmra.mrb[44].mxu1 %vm345_vm2, %v3127_v23  ;;  %3172 = vmatmul.mubr.msk.bf16.vlgmr.msra.gmra.mrb[0].mxu0 %vm345_vm2, %v4284_v4 }
  0xf2   :  { %3378 = vmatprep.mubr.msk.bf16.mxu1 %vm345_vm2, %v4284_v4  ;;  %2072 = vmatprep.mubr.bf16.mxu0 %v3770_v0  ;;  %v3690_v4 = vld [vmem:[%s5044_s0 + $0x34] sm:$0xf] }
  0xf3   :  { %v1924_v38 = vrot.slane %v3690_v4, 6 }
  0xf5   :  { %v1926_v8 = vrot.slane %v1924_v38, 4  ;;  %v1925_v2 = vsel %vm4269_vm9, %v3154_v30, %v1924_v38 }
  0xf9   :  { %3379 = vmatmul.mubr.msk.bf16.vlgmr.msra.gmra.mrb[32].mxu1 %vm345_vm2, %v4288_v39  ;;  %3173 = vmatmul.mubr.msk.bf16.gmra.mrb[4].mxu0 %vm345_vm2, %v4288_v39  ;;  %v1928_v39 = vsel %vm4269_vm9, %v1926_v8, %v1927_v58  ;;  %v3664_v58 = vld [vmem:[#allocation5 + $0x40] sm:$0xff]  }
  0xfa   :  { %3382 = vmatprep.mubr.msk.bf16.mxu1 %vm345_vm2, %v3160_v34  ;;  %2082 = vmatprep.mubr.bf16.mxu0 %v3770_v0  ;;  %v3162_v32 = vcombine.low %v1925_v2, %v1928_v39  ;;  %v3669_v2 = vld [vmem:[#allocation5 + $0x10] sm:$0xff]   ;;  %v3670_v39 = vld [vmem:[#allocation5 + $0x58] sm:$0xff]  }
  0xfb   :  { %3263 = vmatprep.subr.bf16.mxu1 %v3664_v58 }
  0xfc   :  { %3264 = vmatpush3.bf16.msra.mxu1 %v3665_v17 }
  0xfd   :  { %3265 = vmatprep.subr.bf16.mxu1 %v3666_v21 }
 0x100   :  { %3266 = vmatpush3.bf16.msra.mxu1 %v3667_v59 }
 0x101   :  { %3383 = vmatmul.mubr.msk.bf16.gmra.mrb[36].mxu1 %vm345_vm2, %v3161_v25  ;;  %3174 = vmatmul.mubr.msk.bf16.gmra.mrb[8].mxu0 %vm345_vm2, %v3160_v34 }
 0x102   :  { %3386 = vmatprep.mubr.msk.bf16.mxu1 %vm345_vm2, %v3162_v32  ;;  %2092 = vmatprep.mubr.bf16.mxu0 %v3770_v0 }
 0x103   :  { %3267 = vmatprep.subr.bf16.mxu1 %v3668_v7  ;;  %v4742_v7 = vld [vmem:[%s5047_s3 + $0x10] sm:$0xff] }
 0x104   :  { %3268 = vmatpush3.bf16.msra.mxu1 %v3669_v2  ;;  %v4747_v2 = vld [vmem:[%s5047_s3 + $0x28] sm:$0xff] }
 0x105   :  { %3269 = vmatprep.subr.bf16.mxu1 %v3670_v39 }
 0x108   :  { %3270 = vmatpush3.bf16.msra.mxu1 %v3671_v55 }
 0x109   :  { %3387 = vmatmul.mubr.msk.bf16.gmra.mrb[40].mxu1 %vm345_vm2, %v3163_v47  ;;  %3175 = vmatmul.mubr.msk.bf16.gmra.mrb[12].mxu0 %vm345_vm2, %v3161_v25  ;;  %v3674_v25 = vld [vmem:[#allocation5 + $0x68] sm:$0xff]  }
 0x10a   :  { %3390 = vmatprep.mubr.msk.bf16.mxu1 %vm345_vm2, %v3164_v5  ;;  %2102 = vmatprep.mubr.bf16.mxu0 %v3770_v0 }
 0x10b   :  { %3271 = vmatprep.subr.bf16.mxu1 %v3672_v50 }
 0x10c   :  { %v4635_v31 = vpop.f32.mrb[0].mxu1  ;;  %3272 = vmatpush3.bf16.msra.mxu1 %v3673_v49 }
 0x10d   :  { %v4637_v10 = vpop.f32.mrb[1].mxu1  ;;  %3273 = vmatprep.subr.bf16.mxu1 %v3674_v25 }
 0x10e   :  { %v4639_v54 = vpop.f32.mrb[2].mxu1 }
 0x10f   :  { %v4641_v6 = vpop.f32.mrb[3].mxu1 }
 0x111   :  { %3391 = vmatmul.mubr.msk.bf16.gmra.mrb[44].mxu1 %vm345_vm2, %v3165_v51  ;;  %3176 = vmatmul.mubr.msk.bf16.gmra.mrb[16].mxu0 %vm345_vm2, %v3162_v32  ;;  %v3675_v32 = vld [vmem:[#allocation5 + $0x28] sm:$0xff]  }
 0x112   :  { %2112 = vmatprep.mubr.bf16.mxu0 %v3770_v0  ;;  %3274 = vmatpush3.bf16.msra.mxu1 %v3675_v32 }
 0x113   :  { %3275 = vmatprep.subr.bf16.mxu1 %v3676_v20 }
 0x114   :  { %v4646_v35 = vpop.f32.mrb[4].mxu1 }
 0x115   :  { %v4648_v53 = vpop.f32.mrb[5].mxu1 }
 0x116   :  { %v4650_v9 = vpop.f32.mrb[6].mxu1  ;;  %3276 = vmatpush3.bf16.msra.mxu1 %v3677_v13 }
 0x117   :  { %v4652_v56 = vpop.f32.mrb[7].mxu1  ;;  %3277 = vmatprep.subr.bf16.mxu1 %v3678_v46 }
 0x119   :  { %3177 = vmatmul.mubr.msk.bf16.gmra.mrb[20].mxu0 %vm345_vm2, %v3163_v47  ;;  %v4718_v47 = vld [vmem:[%s5047_s3 + $0x18] sm:$0xff] }
 0x11a   :  { %2122 = vmatprep.mubr.bf16.mxu0 %v3770_v0  ;;  %3278 = vmatpush3.bf16.msra.mxu1 %v3679_v60 }
 0x11b   :  { %3394 = vmatprep.subr.bf16.mxu1 %v5054_v29 }
 0x11c   :  { %v4656_v42 = vpop.f32.mrb[8].mxu1 }
 0x11d   :  { %v4658_v11 = vpop.f32.mrb[9].mxu1 }
 0x11e   :  { %v4660_v23 = vpop.f32.mrb[10].mxu1 }
 0x11f   :  { %v4662_v52 = vpop.f32.mrb[11].mxu1 }
 0x121   :  { %3178 = vmatmul.mubr.msk.bf16.gmra.mrb[24].mxu0 %vm345_vm2, %v3164_v5  ;;  %v2537_v5 = vshrl.u32 %v2536_v24, 7 }
 0x122   :  { %2132 = vmatprep.mubr.bf16.mxu0 %v3770_v0 }
 0x123   :  { %v2538_v58 = vsub.s32 0, %v2537_v5  ;;  %v2546_v49 = vsub.s32 2, %v2537_v5  ;;  %v2542_v46 = vsub.s32 1, %v2537_v5 }
 0x124   :  { %v4666_v22 = vpop.f32.mrb[12].mxu1 }
 0x125   :  { %v4668_v62 = vpop.f32.mrb[13].mxu1 }
 0x126   :  { %v4670_v63 = vpop.f32.mrb[14].mxu1 }
 0x127   :  { %v4672_v36 = vpop.f32.mrb[15].mxu1 }
 0x129   :  { %3179 = vmatmul.mubr.msk.bf16.gmra.mrb[28].mxu0 %vm345_vm2, %v3165_v51  ;;  %vm2742_vm2 = vcmask 1046534  }
 0x12c   :  { %v4675_v61 = vpop.f32.mrb[16].mxu1 }
 0x12d   :  { %v4677_v41 = vpop.f32.mrb[17].mxu1 }
 0x12e   :  { %v4679_v57 = vpop.f32.mrb[18].mxu1 }
 0x12f   :  { %v4681_v12 = vpop.f32.mrb[19].mxu1 }
 0x134   :  { %v4683_v1 = vpop.f32.mrb[20].mxu1 }
 0x135   :  { %v4685_v0 = vpop.f32.mrb[21].mxu1 }
 0x136   :  { %v4687_v3 = vpop.f32.mrb[22].mxu1 }
 0x137   :  { %v4689_v4 = vpop.f32.mrb[23].mxu1 }
 0x13c   :  { %v4691_v38 = vpop.f32.mrb[24].mxu1 }
 0x13d   :  { %v4693_v27 = vpop.f32.mrb[25].mxu1 }
 0x13e   :  { %v4695_v34 = vpop.f32.mrb[26].mxu1 }
 0x13f   :  { %5068 = vst [vmem:[#allocation11_spill] sm:$0xff] %v4695_v34  ;;  %v4697_v37 = vpop.f32.mrb[27].mxu1 }
 0x140   :  { %5069 = vst [vmem:[#allocation12_spill] sm:$0xff] %v4697_v37 }
 0x144   :  { %v4699_v43 = vpop.f32.mrb[28].mxu1 }
 0x145   :  { %5070 = vst [vmem:[#allocation13_spill] sm:$0xff] %v4699_v43  ;;  %v4701_v48 = vpop.f32.mrb[29].mxu1 }
 0x146   :  { %5071 = vst [vmem:[#allocation14_spill] sm:$0xff] %v4701_v48  ;;  %v4703_v30 = vpop.f32.mrb[30].mxu1 }
 0x147   :  { %5072 = vst [vmem:[#allocation15_spill] sm:$0xff] %v4703_v30  ;;  %v4705_v8 = vpop.f32.mrb[31].mxu1 }
 0x148   :  { %5073 = vst [vmem:[#allocation16_spill] sm:$0xff] %v4705_v8 }
 0x1c4   :  { %v2064_v26 = vpop.f32.mrb[0].mxu0 }
 0x1c5   :  { %v3414_v33 = vadd.f32 %v2064_v26, %v4635_v31  ;;  %v2066_v28 = vpop.f32.mrb[1].mxu0 }
 0x1c6   :  { %v3415_v40 = vadd.f32 %v2066_v28, %v4637_v10  ;;  %v2068_v19 = vpop.f32.mrb[2].mxu0 }
 0x1c7   :  { %v3416_v16 = vadd.f32 %v2068_v19, %v4639_v54  ;;  %v2070_v44 = vpop.f32.mrb[3].mxu0  ;;  %v2294_v31 = vadd.f32 %v3414_v33, %v4712_v45  ;;  %v2534_v54 = vld [vmem:[%s5046_s2] sm:$0x7] }
 0x1c8   :  { %v3417_v14 = vadd.f32 %v2070_v44, %v4641_v6  ;;  %v2295_v10 = vadd.f32 %v3415_v40, %v4723_v15  ;;  %v4750_v20 = vrot.slane %v2534_v54, %v2538_v58 }
 0x1c9   :  { %v2297_v51 = vadd.f32 %v3416_v16, %v4718_v47 }
 0x1ca   :  { %v2298_v17 = vadd.f32 %v3417_v14, %v4729_v18 }
 0x1cb   :  { %v2342_v21 = vmax.f32 %v2294_v31, %v2297_v51 }
 0x1cc   :  { %v3380_v59 = vpop.f32.mrb[32].mxu1  ;;  %v2349_v6 = vmax.f32 %v2295_v10, %v2298_v17  ;;  %v2074_v39 = vpop.f32.mrb[4].mxu0 }
 0x1cd   :  { %v2343_v55 = vrot.slane %v2342_v21, 4  ;;  %v2177_v50 = vpop.f32.mrb[33].mxu1  ;;  %v3418_v25 = vadd.f32 %v2074_v39, %v4646_v35  ;;  %v2076_v32 = vpop.f32.mrb[5].mxu0  ;;  %v2302_v33 = vadd.f32 %v3380_v59, %v4742_v7 }
 0x1ce   :  { %v2350_v13 = vrot.slane %v2349_v6, 4  ;;  %v3381_v60 = vpop.f32.mrb[34].mxu1  ;;  %v3419_v24 = vadd.f32 %v2076_v32, %v4648_v53  ;;  %v2078_v26 = vpop.f32.mrb[6].mxu0  ;;  %v2296_v35 = vadd.f32 %v4742_v7, %v2177_v50  ;;  %v4763_v50 = vrot.slane %v2534_v54, %v2546_v49 }
 0x1cf   :  { %v2344_v28 = vmax.f32 %v2342_v21, %v2343_v55  ;;  %v2305_v40 = vadd.f32 %v3381_v60, %v4747_v2  ;;  %v2180_v19 = vpop.f32.mrb[35].mxu1  ;;  %v3420_v16 = vadd.f32 %v2078_v26, %v4650_v9  ;;  %v2080_v44 = vpop.f32.mrb[7].mxu0  ;;  %v2300_v53 = vadd.f32 %v3418_v25, %v4712_v45 }
 0x1d0   :  { %v2351_v14 = vmax.f32 %v2349_v6, %v2350_v13  ;;  %v2299_v31 = vadd.f32 %v4747_v2, %v2180_v19  ;;  %v3421_v5 = vadd.f32 %v2080_v44, %v4652_v56  ;;  %v2301_v59 = vadd.f32 %v3419_v24, %v4723_v15 }
 0x1d1   :  { %v2345_v51 = vrot.slane %v2344_v28, 2  ;;  %v2377_v10 = vmax.f32 %v2302_v33, %v2305_v40  ;;  %v2303_v58 = vadd.f32 %v3420_v16, %v4718_v47  ;;  %v4765_v13 = vrot.slane %v2534_v54, %v2542_v46 }
 0x1d2   :  { %v2352_v17 = vrot.slane %v2351_v14, 2  ;;  %v2356_v21 = vmax.f32 %v2296_v35, %v2299_v31  ;;  %v2304_v9 = vadd.f32 %v3421_v5, %v4729_v18 }
 0x1d3   :  { %v2346_v39 = vmax.f32 %v2344_v28, %v2345_v51  ;;  %v2378_v55 = vrot.slane %v2377_v10, 4  ;;  %v2363_v6 = vmax.f32 %v2300_v53, %v2303_v58 }
 0x1d4   :  { %v2353_v32 = vmax.f32 %v2351_v14, %v2352_v17  ;;  %v2357_v56 = vrot.slane %v2356_v21, 4  ;;  %v3384_v60 = vpop.f32.mrb[36].mxu1  ;;  %v2370_v26 = vmax.f32 %v2301_v59, %v2304_v9  ;;  %v4767_v25 = vpop.f32.mrb[8].mxu0 }
 0x1d5   :  { %v2347_v33 = vrot.slane %v2346_v39, 1  ;;  %v2379_v40 = vmax.f32 %v2377_v10, %v2378_v55  ;;  %v2314_v19 = vadd.f32 %v3384_v60, %v4742_v7  ;;  %v2364_v24 = vrot.slane %v2363_v6, 4  ;;  %v2193_v16 = vpop.f32.mrb[37].mxu1  ;;  %v4770_v44 = vpop.f32.mrb[9].mxu0 }
 0x1d6   :  { %v2354_v28 = vrot.slane %v2353_v32, 1  ;;  %v2358_v49 = vmax.f32 %v2356_v21, %v2357_v56  ;;  %v2308_v35 = vadd.f32 %v4742_v7, %v2193_v16  ;;  %v2371_v14 = vrot.slane %v2370_v26, 4  ;;  %v3385_v54 = vpop.f32.mrb[38].mxu1  ;;  %v4773_v46 = vpop.f32.mrb[10].mxu0 }
 0x1d7   :  { %v2348_v31 = vmax.f32 %v2346_v39, %v2347_v33  ;;  %v2380_v5 = vrot.slane %v2379_v40, 2  ;;  %v2365_v51 = vmax.f32 %v2363_v6, %v2364_v24  ;;  %v2317_v53 = vadd.f32 %v3385_v54, %v4747_v2  ;;  %v2196_v10 = vpop.f32.mrb[39].mxu1  ;;  %v4776_v58 = vpop.f32.mrb[11].mxu0 }
 0x1d8   :  { %v2355_v17 = vmax.f32 %v2353_v32, %v2354_v28  ;;  %v2359_v59 = vrot.slane %v2358_v49, 2  ;;  %v2372_v9 = vmax.f32 %v2370_v26, %v2371_v14  ;;  %v2311_v55 = vadd.f32 %v4747_v2, %v2196_v10 }
 0x1d9   :  { %v2510_v21 = vmax.f32 %v2348_v31, -1e+30  ;;  %v2381_v56 = vmax.f32 %v2379_v40, %v2380_v5  ;;  %v2366_v60 = vrot.slane %v2365_v51, 2  ;;  %v2419_v16 = vmax.f32 %v2314_v19, %v2317_v53 }
 0x1da   :  { %v2511_v29 = vmax.f32 %v2355_v17, -1e+30  ;;  %v2360_v8 = vmax.f32 %v2358_v49, %v2359_v59  ;;  %v2373_v30 = vrot.slane %v2372_v9, 2  ;;  %v2398_v39 = vmax.f32 %v2308_v35, %v2311_v55 }
 0x1db   :  { %v2551_v6 = vadd.f32 %v4750_v20, %v2510_v21  ;;  %v2382_v33 = vrot.slane %v2381_v56, 1  ;;  %v2367_v24 = vmax.f32 %v2365_v51, %v2366_v60  ;;  %v2420_v54 = vrot.slane %v2419_v16, 4 }
 0x1dc   :  { %v2552_v48 = vadd.f32 %v4765_v13, %v2511_v29  ;;  %v2361_v32 = vrot.slane %v2360_v8, 1  ;;  %v2374_v28 = vmax.f32 %v2372_v9, %v2373_v30  ;;  %v2399_v26 = vrot.slane %v2398_v39, 4  ;;  %v4781_v14 = vpop.f32.mrb[40].mxu1  ;;  %v4783_v31 = vpop.f32.mrb[12].mxu0 }
 0x1dd   :  { %v2575_v40 = vmax.f32 %v2551_v6, 0.0  ;;  %v2383_v19 = vmax.f32 %v2381_v56, %v2382_v33  ;;  %v2368_v5 = vrot.slane %v2367_v24, 1  ;;  %v2421_v49 = vmax.f32 %v2419_v16, %v2420_v54  ;;  %v4785_v53 = vpop.f32.mrb[41].mxu1  ;;  %v4787_v35 = vpop.f32.mrb[13].mxu0 }
 0x1de   :  { %v2576_v10 = vmax.f32 %v2552_v48, 0.0  ;;  %v2362_v51 = vmax.f32 %v2360_v8, %v2361_v32  ;;  %v2375_v17 = vrot.slane %v2374_v28, 1  ;;  %v2400_v59 = vmax.f32 %v2398_v39, %v2399_v26  ;;  %v4789_v29 = vpop.f32.mrb[42].mxu1  ;;  %v4791_v30 = vpop.f32.mrb[14].mxu0 }
 0x1df   :  { %v4793_v9 = vpack.c.bf16 %v2575_v40, %v2575_v40  ;;  %v2515_v55 = vmax.f32 %v2383_v19, -1e+30  ;;  %v2369_v21 = vmax.f32 %v2367_v24, %v2368_v5  ;;  %v2422_v60 = vrot.slane %v2421_v49, 2  ;;  %v4795_v56 = vpop.f32.mrb[43].mxu1  ;;  %v4797_v16 = vpop.f32.mrb[15].mxu0 }
 0x1e0   :  { %v2512_v6 = vmax.f32 %v2362_v51, -1e+30  ;;  %v2376_v33 = vmax.f32 %v2374_v28, %v2375_v17  ;;  %v2401_v48 = vrot.slane %v2400_v59, 2  ;;  %v4799_v8 = vpack.c.bf16 %v2576_v10, %v2576_v10 }
 0x1e1   :  { %v2556_v39 = vadd.f32 %v4763_v50, %v2515_v55  ;;  %v2513_v54 = vmax.f32 %v2369_v21, -1e+30  ;;  %v2423_v32 = vmax.f32 %v2421_v49, %v2422_v60  ;;  %v2702_v26 = vunpack.c.l.b16 %v4793_v9 }
 0x1e2   :  { %5074 = vst [vmem:[#allocation17_spill] sm:$0xff] %v4799_v8  ;;  %v2553_v40 = vadd.f32 %v4763_v50, %v2512_v6  ;;  %v2514_v24 = vmax.f32 %v2376_v33, -1e+30  ;;  %v2402_v19 = vmax.f32 %v2400_v59, %v2401_v48  ;;  %v3422_v28 = vadd.f32 %v4767_v25, %v4656_v42 }
 0x1e3   :  { %v2580_v5 = vmax.f32 %v2556_v39, 0.0  ;;  %v2554_v43 = vadd.f32 %v4750_v20, %v2513_v54  ;;  %v2424_v37 = vrot.slane %v2423_v32, 1  ;;  %v3423_v49 = vadd.f32 %v4770_v44, %v4658_v11 }
 0x1e4   :  { %v2577_v51 = vmax.f32 %v2553_v40, 0.0  ;;  %v2555_v10 = vadd.f32 %v4765_v13, %v2514_v24  ;;  %v2403_v17 = vrot.slane %v2402_v19, 1  ;;  %v4810_v55 = vpop.f32.mrb[44].mxu1  ;;  %v4812_v9 = vpop.f32.mrb[16].mxu0  ;;  %v2306_v54 = vadd.f32 %v3422_v28, %v4712_v45 }
 0x1e5   :  { %v2604_v21 = vpack.c.bf16 %v2580_v5, %v2580_v5  ;;  %v2578_v60 = vmax.f32 %v2554_v43, 0.0  ;;  %v2425_v6 = vmax.f32 %v2423_v32, %v2424_v37  ;;  %v4815_v33 = vpop.f32.mrb[45].mxu1  ;;  %v4817_v48 = vpop.f32.mrb[17].mxu0  ;;  %v2307_v5 = vadd.f32 %v3423_v49, %v4723_v15 }
 0x1e6   :  { %v2601_v42 = vpack.c.bf16 %v2577_v51, %v2577_v51  ;;  %v2579_v25 = vmax.f32 %v2555_v10, 0.0  ;;  %v2404_v39 = vmax.f32 %v2402_v19, %v2403_v17  ;;  %v4820_v40 = vpop.f32.mrb[46].mxu1  ;;  %v4822_v11 = vpop.f32.mrb[18].mxu0  ;;  %v3424_v19 = vadd.f32 %v4773_v46, %v4660_v23 }
 0x1e7   :  { %v2707_v44 = vunpack.c.l.b16 %v2604_v21  ;;  %v2602_v24 = vpack.c.bf16 %v2578_v60, %v2578_v60  ;;  %v2521_v34 = vmax.f32 %v2425_v6, -1e+30  ;;  %v4825_v43 = vpop.f32.mrb[47].mxu1  ;;  %v4827_v37 = vpop.f32.mrb[19].mxu0  ;;  %v2326_v21 = vadd.f32 %v4781_v14, %v4742_v7 }
 0x1e8   :  { %v2704_v32 = vunpack.c.l.b16 %v2601_v42  ;;  %v2603_v59 = vpack.c.bf16 %v2579_v25, %v2579_v25  ;;  %v2518_v51 = vmax.f32 %v2404_v39, -1e+30  ;;  %v2309_v6 = vadd.f32 %v3424_v19, %v4718_v47 }
 0x1e9   :  { %v2761_v28 = vrot.slane %v2707_v44, 7  ;;  %v2705_v10 = vunpack.c.l.b16 %v2602_v24  ;;  %v2562_v17 = vadd.f32 %v4763_v50, %v2521_v34  ;;  %v3425_v42 = vadd.f32 %v4776_v58, %v4662_v52 }
 0x1ea   :  { %v2706_v60 = vunpack.c.l.b16 %v2603_v59  ;;  %v2559_v49 = vadd.f32 %v4763_v50, %v2518_v51  ;;  %v2329_v46 = vadd.f32 %v4789_v29, %v4747_v2  ;;  %v2384_v44 = vmax.f32 %v2306_v54, %v2309_v6 }
 0x1eb   :  { %v2762_v25 = vsel %vm2727_vm13, %v2761_v28, %v2704_v32  ;;  %v2726_v39 = vrot.slane %v2705_v10, 7  ;;  %v2586_v23 = vmax.f32 %v2562_v17, 0.0  ;;  %v2320_v14 = vadd.f32 %v4742_v7, %v4785_v53 }
 0x1ec   :  { %v2583_v34 = vmax.f32 %v2559_v49, 0.0  ;;  %v2310_v59 = vadd.f32 %v3425_v42, %v4729_v18  ;;  %v4844_v24 = vpop.f32.mrb[20].mxu0  ;;  %v2461_v58 = vmax.f32 %v2326_v21, %v2329_v46  ;;  %v2323_v32 = vadd.f32 %v4747_v2, %v4795_v56 }
 0x1ed   :  { %v4847_v51 = vsel %vm2727_vm13, %v2726_v39, %v2702_v26  ;;  %v4849_v52 = vpack.c.bf16 %v2586_v23, %v2586_v23  ;;  %v4853_v19 = vpop.f32.mrb[21].mxu0  ;;  %v2385_v54 = vrot.slane %v2384_v44, 4  ;;  %v3426_v53 = vadd.f32 %v4783_v31, %v4666_v22 }
 0x1ee   :  { %v2607_v29 = vpack.c.bf16 %v2583_v34, %v2583_v34  ;;  %v2391_v28 = vmax.f32 %v2307_v5, %v2310_v59  ;;  %v4857_v10 = vpop.f32.mrb[22].mxu0  ;;  %v4859_v17 = vrot.slane %v2706_v60, 7  ;;  %v2462_v26 = vrot.slane %v2461_v58, 4 }
 0x1ef   :  { %v2440_v49 = vmax.f32 %v2320_v14, %v2323_v32  ;;  %v3427_v21 = vadd.f32 %v4787_v35, %v4668_v62  ;;  %v4863_v6 = vpop.f32.mrb[23].mxu0  ;;  %v2386_v39 = vmax.f32 %v2384_v44, %v2385_v54  ;;  %v2312_v22 = vadd.f32 %v3426_v53, %v4712_v45 }
 0x1f0   :  { %5075 = vst [vmem:[#allocation18_spill] sm:$0xff] %v4859_v17  ;;  %v2710_v42 = vunpack.c.l.b16 %v2607_v29  ;;  %v2392_v23 = vrot.slane %v2391_v28, 4  ;;  %v2463_v5 = vmax.f32 %v2461_v58, %v2462_v26  ;;  %v2338_v14 = vadd.f32 %v4810_v55, %v4742_v7 }
 0x1f1   :  { %v2441_v46 = vrot.slane %v2440_v49, 4  ;;  %v2313_v31 = vadd.f32 %v3427_v21, %v4723_v15  ;;  %v2387_v34 = vrot.slane %v2386_v39, 2  ;;  %v3428_v32 = vadd.f32 %v4791_v30, %v4670_v63 }
 0x1f2   :  { %v2763_v60 = vrot.slane %v2710_v42, 6  ;;  %v2393_v59 = vmax.f32 %v2391_v28, %v2392_v23  ;;  %v2464_v62 = vrot.slane %v2463_v5, 2  ;;  %v2332_v44 = vadd.f32 %v4742_v7, %v4815_v33 }
 0x1f3   :  { %v2442_v35 = vmax.f32 %v2440_v49, %v2441_v46  ;;  %v2388_v29 = vmax.f32 %v2386_v39, %v2387_v34  ;;  %v3429_v53 = vadd.f32 %v4797_v16, %v4672_v36  ;;  %v2315_v49 = vadd.f32 %v3428_v32, %v4718_v47 }
 0x1f4   :  { %v4875_v58 = vsel %vm2730_vm14, %v2763_v60, %v2762_v25  ;;  %v2394_v54 = vrot.slane %v2393_v59, 2  ;;  %v4879_v28 = vpop.f32.mrb[24].mxu0  ;;  %v2465_v26 = vmax.f32 %v2463_v5, %v2464_v62  ;;  %v2341_v63 = vadd.f32 %v4820_v40, %v4747_v2 }
 0x1f5   :  { %5076 = vst [vmem:[#allocation19_spill] sm:$0xff] %v4875_v58  ;;  %v2443_v55 = vrot.slane %v2442_v35, 2  ;;  %v4884_v30 = vpop.f32.mrb[25].mxu0  ;;  %v2389_v7 = vrot.slane %v2388_v29, 1  ;;  %v2316_v25 = vadd.f32 %v3429_v53, %v4729_v18  ;;  %v2335_v21 = vadd.f32 %v4747_v2, %v4825_v43 }
 0x1f6   :  { %v2395_v33 = vmax.f32 %v2393_v59, %v2394_v54  ;;  %v4889_v42 = vpop.f32.mrb[26].mxu0  ;;  %v2466_v36 = vrot.slane %v2465_v26, 1  ;;  %v2405_v39 = vmax.f32 %v2312_v22, %v2315_v49  ;;  %v2503_v23 = vmax.f32 %v2338_v14, %v2341_v63 }
 0x1f7   :  { %v2444_v16 = vmax.f32 %v2442_v35, %v2443_v55  ;;  %v4891_v5 = vpop.f32.mrb[27].mxu0  ;;  %v2390_v46 = vmax.f32 %v2388_v29, %v2389_v7  ;;  %v2412_v40 = vmax.f32 %v2313_v31, %v2316_v25  ;;  %v2482_v34 = vmax.f32 %v2332_v44, %v2335_v21 }
 0x1f8   :  { %v2396_v60 = vrot.slane %v2395_v33, 1  ;;  %v2467_v62 = vmax.f32 %v2465_v26, %v2466_v36  ;;  %v2406_v59 = vrot.slane %v2405_v39, 4  ;;  %v2504_v54 = vrot.slane %v2503_v23, 4 }
 0x1f9   :  { %v2445_v32 = vrot.slane %v2444_v16, 1  ;;  %v2516_v53 = vmax.f32 %v2390_v46, -1e+30  ;;  %v2413_v58 = vrot.slane %v2412_v40, 4  ;;  %v2483_v2 = vrot.slane %v2482_v34, 4 }
 0x1fa   :  { %v2397_v56 = vmax.f32 %v2395_v33, %v2396_v60  ;;  %v2527_v43 = vmax.f32 %v2467_v62, -1e+30  ;;  %v2407_v8 = vmax.f32 %v2405_v39, %v2406_v59  ;;  %v2505_v35 = vmax.f32 %v2503_v23, %v2504_v54 }
 0x1fb   :  { %v2446_v17 = vmax.f32 %v2444_v16, %v2445_v32  ;;  %v2557_v22 = vadd.f32 %v4750_v20, %v2516_v53  ;;  %v2414_v55 = vmax.f32 %v2412_v40, %v2413_v58  ;;  %v2484_v29 = vmax.f32 %v2482_v34, %v2483_v2 }
 0x1fc   :  { %v2517_v14 = vmax.f32 %v2397_v56, -1e+30  ;;  %v4894_v49 = vpop.f32.mrb[28].mxu0  ;;  %v2568_v31 = vadd.f32 %v4763_v50, %v2527_v43  ;;  %v2408_v26 = vrot.slane %v2407_v8, 2  ;;  %v2506_v63 = vrot.slane %v2505_v35, 2 }
 0x1fd   :  { %v2524_v44 = vmax.f32 %v2446_v17, -1e+30  ;;  %v4897_v7 = vpop.f32.mrb[29].mxu0  ;;  %v2581_v33 = vmax.f32 %v2557_v22, 0.0  ;;  %v2415_v21 = vrot.slane %v2414_v55, 2  ;;  %v2485_v36 = vrot.slane %v2484_v29, 2 }
 0x1fe   :  { %v2558_v25 = vadd.f32 %v4765_v13, %v2517_v14  ;;  %v4900_v16 = vpop.f32.mrb[30].mxu0  ;;  %v2592_v39 = vmax.f32 %v2568_v31, 0.0  ;;  %v2409_v58 = vmax.f32 %v2407_v8, %v2408_v26  ;;  %v2507_v23 = vmax.f32 %v2505_v35, %v2506_v63 }
 0x1ff   :  { %5077 = vst [vmem:[#allocation20_spill] sm:$0xff] %v4900_v16  ;;  %v2565_v56 = vadd.f32 %v4763_v50, %v2524_v44  ;;  %v4903_v46 = vpop.f32.mrb[31].mxu0  ;;  %v2605_v60 = vpack.c.bf16 %v2581_v33, %v2581_v33  ;;  %v2416_v40 = vmax.f32 %v2414_v55, %v2415_v21  ;;  %v2486_v34 = vmax.f32 %v2484_v29, %v2485_v36 }
 0x200   :  { %v2582_v17 = vmax.f32 %v2558_v25, 0.0  ;;  %v2616_v62 = vpack.c.bf16 %v2592_v39, %v2592_v39  ;;  %v2410_v59 = vrot.slane %v2409_v58, 1  ;;  %v2508_v54 = vrot.slane %v2507_v23, 1 }
 0x201   :  { %v2589_v32 = vmax.f32 %v2565_v56, 0.0  ;;  %v2708_v53 = vunpack.c.l.b16 %v2605_v60  ;;  %v2417_v43 = vrot.slane %v2416_v40, 1  ;;  %v2487_v22 = vrot.slane %v2486_v34, 1 }
 0x202   :  { %v2606_v2 = vpack.c.bf16 %v2582_v17, %v2582_v17  ;;  %v2719_v14 = vunpack.c.l.b16 %v2616_v62  ;;  %v2411_v16 = vmax.f32 %v2409_v58, %v2410_v59  ;;  %v2509_v44 = vmax.f32 %v2507_v23, %v2508_v54 }
 0x203   :  { %v2613_v31 = vpack.c.bf16 %v2589_v32, %v2589_v32  ;;  %v2729_v8 = vrot.slane %v2708_v53, 6  ;;  %v2418_v26 = vmax.f32 %v2416_v40, %v2417_v43  ;;  %v2488_v63 = vmax.f32 %v2486_v34, %v2487_v22 }
 0x204   :  { %v2709_v35 = vunpack.c.l.b16 %v2606_v2  ;;  %v5078_v33 = vunpack.c.l.b16 %v4849_v52  ;;  %v4909_v29 = vrot.slane %v2719_v14, 3  ;;  %v2519_v25 = vmax.f32 %v2411_v16, -1e+30 }
 0x205   :  { %v2533_v21 = vmax.f32 %v2509_v44, -1e+30  ;;  %v4913_v36 = vsel %vm2730_vm14, %v2729_v8, %v4847_v51  ;;  %v2716_v39 = vunpack.c.l.b16 %v2613_v31  ;;  %v2520_v56 = vmax.f32 %v2418_v26, -1e+30 }
 0x206   :  { %v4907_v55 = vrot.slane %v5078_v33, 5  ;;  %v2530_v58 = vmax.f32 %v2488_v63, -1e+30  ;;  %v4915_v23 = vrot.slane %v2709_v35, 6  ;;  %v2560_v60 = vadd.f32 %v4750_v20, %v2519_v25 }
 0x207   :  { %v2574_v17 = vadd.f32 %v4763_v50, %v2533_v21  ;;  %v3430_v52 = vadd.f32 %v4812_v9, %v4675_v61  ;;  %v2561_v40 = vadd.f32 %v4765_v13, %v2520_v56  ;;  %v3431_v51 = vadd.f32 %v4817_v48, %v4677_v41 }
 0x208   :  { %v2571_v16 = vadd.f32 %v4763_v50, %v2530_v58  ;;  %v3432_v34 = vadd.f32 %v4822_v11, %v4679_v57  ;;  %v2584_v62 = vmax.f32 %v2560_v60, 0.0  ;;  %v3433_v54 = vadd.f32 %v4827_v37, %v4681_v12 }
 0x209   :  { %v2598_v32 = vmax.f32 %v2574_v17, 0.0  ;;  %v2318_v59 = vadd.f32 %v3430_v52, %v4712_v45  ;;  %v2585_v53 = vmax.f32 %v2561_v40, 0.0  ;;  %v2319_v61 = vadd.f32 %v3431_v51, %v4723_v15  ;;  %v5080_v52 = vld [vmem:[#allocation12_spill] sm:$0xff] }
 0x20a   :  { %v2595_v2 = vmax.f32 %v2571_v16, 0.0  ;;  %v2321_v9 = vadd.f32 %v3432_v34, %v4718_v47  ;;  %v2608_v50 = vpack.c.bf16 %v2584_v62, %v2584_v62  ;;  %v2322_v41 = vadd.f32 %v3433_v54, %v4729_v18 }
 0x20b   :  { %v4932_v43 = vpack.c.bf16 %v2598_v32, %v2598_v32  ;;  %v3434_v57 = vadd.f32 %v4844_v24, %v4683_v1  ;;  %v2609_v48 = vpack.c.bf16 %v2585_v53, %v2585_v53  ;;  %v3435_v12 = vadd.f32 %v4853_v19, %v4685_v0 }
 0x20c   :  { %v4937_v11 = vpack.c.bf16 %v2595_v2, %v2595_v2  ;;  %v2426_v22 = vmax.f32 %v2318_v59, %v2321_v9  ;;  %v4941_v37 = vrot.slane %v2716_v39, 4  ;;  %v2711_v14 = vunpack.c.l.b16 %v2608_v50 }
 0x20d   :  { %v2725_v31 = vunpack.c.l.b16 %v4932_v43  ;;  %v2433_v44 = vmax.f32 %v2319_v61, %v2322_v41  ;;  %v2712_v8 = vunpack.c.l.b16 %v2609_v48  ;;  %v2324_v63 = vadd.f32 %v3434_v57, %v4712_v45 }
 0x20e   :  { %v2722_v35 = vunpack.c.l.b16 %v4937_v11  ;;  %v2427_v26 = vrot.slane %v2426_v22, 4  ;;  %v2325_v24 = vadd.f32 %v3435_v12, %v4723_v15  ;;  %v3436_v33 = vadd.f32 %v4857_v10, %v4687_v3 }
 0x20f   :  { %v2434_v1 = vrot.slane %v2433_v44, 4  ;;  %v3437_v0 = vadd.f32 %v4863_v6, %v4689_v4  ;;  %v4951_v19 = vrot.slane %v2711_v14, 5  ;;  %v4953_v25 = vrot.slane %v2712_v8, 5  ;;  %v5079_v4 = vld [vmem:[#allocation11_spill] sm:$0xff]  ;;  %v5084_v8 = vld [vmem:[#allocation20_spill] sm:$0xff] }
 0x210   :  { %v2428_v21 = vmax.f32 %v2426_v22, %v2427_v26  ;;  %v3438_v39 = vadd.f32 %v4879_v28, %v4691_v38  ;;  %v2327_v58 = vadd.f32 %v3436_v33, %v4718_v47  ;;  %v3439_v17 = vadd.f32 %v4884_v30, %v4693_v27  ;;  %v5081_v27 = vld [vmem:[#allocation13_spill] sm:$0xff] }
 0x211   :  { %v2435_v56 = vmax.f32 %v2433_v44, %v2434_v1  ;;  %v2328_v60 = vadd.f32 %v3437_v0, %v4729_v18  ;;  %v3440_v6 = vadd.f32 %v4889_v42, %v5079_v4  ;;  %v3441_v40 = vadd.f32 %v4891_v5, %v5080_v52  ;;  %v5082_v42 = vld [vmem:[#allocation14_spill] sm:$0xff] }
 0x212   :  { %v2429_v3 = vrot.slane %v2428_v21, 2  ;;  %v2330_v10 = vadd.f32 %v3438_v39, %v4712_v45  ;;  %v2447_v51 = vmax.f32 %v2324_v63, %v2327_v58  ;;  %v2331_v28 = vadd.f32 %v3439_v17, %v4723_v15 }
 0x213   :  { %v2436_v16 = vrot.slane %v2435_v56, 2  ;;  %v2454_v38 = vmax.f32 %v2325_v24, %v2328_v60  ;;  %v2333_v62 = vadd.f32 %v3440_v6, %v4718_v47  ;;  %v2334_v32 = vadd.f32 %v3441_v40, %v4729_v18 }
 0x214   :  { %v2430_v34 = vmax.f32 %v2428_v21, %v2429_v3  ;;  %v3442_v30 = vadd.f32 %v4894_v49, %v5081_v27  ;;  %v2448_v54 = vrot.slane %v2447_v51, 4  ;;  %v3443_v2 = vadd.f32 %v4897_v7, %v5082_v42  ;;  %v5083_v49 = vld [vmem:[#allocation15_spill] sm:$0xff]  ;;  %v5085_v7 = vld [vmem:[#allocation16_spill] sm:$0xff] }
 0x215   :  { %v2437_v59 = vmax.f32 %v2435_v56, %v2436_v16  ;;  %v2455_v53 = vrot.slane %v2454_v38, 4  ;;  %v2468_v61 = vmax.f32 %v2330_v10, %v2333_v62  ;;  %v2475_v9 = vmax.f32 %v2331_v28, %v2334_v32 }
 0x216   :  { %v2431_v5 = vrot.slane %v2430_v34, 1  ;;  %v2336_v50 = vadd.f32 %v3442_v30, %v4712_v45  ;;  %v2449_v57 = vmax.f32 %v2447_v51, %v2448_v54  ;;  %v2337_v22 = vadd.f32 %v3443_v2, %v4723_v15 }
 0x217   :  { %v2438_v41 = vrot.slane %v2437_v59, 1  ;;  %v2456_v48 = vmax.f32 %v2454_v38, %v2455_v53  ;;  %v2469_v14 = vrot.slane %v2468_v61, 4  ;;  %v2476_v44 = vrot.slane %v2475_v9, 4 }
 0x218   :  { %v2432_v12 = vmax.f32 %v2430_v34, %v2431_v5  ;;  %v3444_v26 = vadd.f32 %v5084_v8, %v5083_v49  ;;  %v2450_v1 = vrot.slane %v2449_v57, 2  ;;  %v3445_v33 = vadd.f32 %v4903_v46, %v5085_v7 }
 0x219   :  { %v2439_v63 = vmax.f32 %v2437_v59, %v2438_v41  ;;  %v2457_v24 = vrot.slane %v2456_v48, 2  ;;  %v2470_v21 = vmax.f32 %v2468_v61, %v2469_v14  ;;  %v2477_v45 = vmax.f32 %v2475_v9, %v2476_v44 }
 0x21a   :  { %v2522_v0 = vmax.f32 %v2432_v12, -1e+30  ;;  %v2339_v39 = vadd.f32 %v3444_v26, %v4718_v47  ;;  %v2451_v58 = vmax.f32 %v2449_v57, %v2450_v1  ;;  %v2340_v60 = vadd.f32 %v3445_v33, %v4729_v18 }
 0x21b   :  { %v2523_v56 = vmax.f32 %v2439_v63, -1e+30  ;;  %v2458_v15 = vmax.f32 %v2456_v48, %v2457_v24  ;;  %v2471_v3 = vrot.slane %v2470_v21, 2  ;;  %v2478_v10 = vrot.slane %v2477_v45, 2 }
 0x21c   :  { %v2563_v17 = vadd.f32 %v4750_v20, %v2522_v0  ;;  %v2489_v4 = vmax.f32 %v2336_v50, %v2339_v39  ;;  %v2452_v52 = vrot.slane %v2451_v58, 1  ;;  %v2496_v46 = vmax.f32 %v2337_v22, %v2340_v60 }
 0x21d   :  { %v2564_v6 = vadd.f32 %v4765_v13, %v2523_v56  ;;  %v2459_v40 = vrot.slane %v2458_v15, 1  ;;  %v2472_v51 = vmax.f32 %v2470_v21, %v2471_v3  ;;  %v2479_v38 = vmax.f32 %v2477_v45, %v2478_v10  ;;  %v5088_v10 = vld [vmem:[#allocation18_spill] sm:$0xff] }
 0x21e   :  { %v2587_v16 = vmax.f32 %v2563_v17, 0.0  ;;  %v2490_v47 = vrot.slane %v2489_v4, 4  ;;  %v2453_v34 = vmax.f32 %v2451_v58, %v2452_v52  ;;  %v2497_v18 = vrot.slane %v2496_v46, 4  ;;  %v5086_v17 = vld [vmem:[#allocation17_spill] sm:$0xff] }
 0x21f   :  { %v2588_v28 = vmax.f32 %v2564_v6, 0.0  ;;  %v2460_v62 = vmax.f32 %v2458_v15, %v2459_v40  ;;  %v2473_v27 = vrot.slane %v2472_v51, 1  ;;  %v2480_v30 = vrot.slane %v2479_v38, 1 }
 0x220   :  { %v2611_v32 = vpack.c.bf16 %v2587_v16, %v2587_v16  ;;  %v2491_v59 = vmax.f32 %v2489_v4, %v2490_v47  ;;  %v2525_v53 = vmax.f32 %v2453_v34, -1e+30  ;;  %v2498_v2 = vmax.f32 %v2496_v46, %v2497_v18 }
 0x221   :  { %v2612_v54 = vpack.c.bf16 %v2588_v28, %v2588_v28  ;;  %v2526_v42 = vmax.f32 %v2460_v62, -1e+30  ;;  %v2474_v61 = vmax.f32 %v2472_v51, %v2473_v27  ;;  %v2481_v9 = vmax.f32 %v2479_v38, %v2480_v30 }
 0x222   :  { %v2714_v5 = vunpack.c.l.b16 %v2611_v32  ;;  %v2492_v50 = vrot.slane %v2491_v59, 2  ;;  %v2566_v57 = vadd.f32 %v4750_v20, %v2525_v53  ;;  %v2499_v22 = vrot.slane %v2498_v2, 2 }
 0x223   :  { %v2715_v41 = vunpack.c.l.b16 %v2612_v54  ;;  %v2567_v48 = vadd.f32 %v4765_v13, %v2526_v42  ;;  %v2528_v14 = vmax.f32 %v2474_v61, -1e+30  ;;  %v2529_v44 = vmax.f32 %v2481_v9, -1e+30  ;;  %v5089_v54 = vld [vmem:[#allocation19_spill] sm:$0xff] }
 0x224   :  { %v2735_v12 = vrot.slane %v2714_v5, 4  ;;  %v2493_v49 = vmax.f32 %v2491_v59, %v2492_v50  ;;  %v2590_v26 = vmax.f32 %v2566_v57, 0.0  ;;  %v2500_v1 = vmax.f32 %v2498_v2, %v2499_v22 }
 0x225   :  { %v2753_v8 = vrot.slane %v2715_v41, 4  ;;  %v2591_v63 = vmax.f32 %v2567_v48, 0.0  ;;  %v2569_v24 = vadd.f32 %v4750_v20, %v2528_v14  ;;  %v2570_v33 = vadd.f32 %v4765_v13, %v2529_v44  ;;  %v3681_v44 = vld [vmem:[#allocation5 + $0x88] sm:$0xff]  }
 0x226   :  { %v2494_v7 = vrot.slane %v2493_v49, 1  ;;  %v2734_v0 = vsel %vm2733_vm15, %v4951_v19, %v4913_v36  ;;  %v2614_v21 = vpack.c.bf16 %v2590_v26, %v2590_v26  ;;  %v2501_v39 = vrot.slane %v2500_v1, 1  ;;  %v3683_v26 = vld [vmem:[#allocation5 + $0x98] sm:$0xff]  }
 0x227   :  { %v2615_v45 = vpack.c.bf16 %v2591_v63, %v2591_v63  ;;  %v2737_v56 = vsel %vm2736_vm0, %v2735_v12, %v2734_v0  ;;  %v2593_v58 = vmax.f32 %v2569_v24, 0.0  ;;  %v2594_v60 = vmax.f32 %v2570_v33, 0.0  ;;  %v3684_v63 = vld [vmem:[#allocation5 + $0xa0] sm:$0xff]   ;;  %v3686_v24 = vld [vmem:[#allocation5 + $0xb0] sm:$0xff]  }
 0x228   :  { %v2495_v15 = vmax.f32 %v2493_v49, %v2494_v7  ;;  %v5087_v3 = vunpack.c.l.b16 %v5086_v17  ;;  %v2717_v6 = vunpack.c.l.b16 %v2614_v21  ;;  %v2502_v52 = vmax.f32 %v2500_v1, %v2501_v39  ;;  %v3685_v1 = vld [vmem:[#allocation5 + $0xa8] sm:$0xff]   ;;  %v3687_v7 = vld [vmem:[#allocation5 + $0xb8] sm:$0xff]  }
 0x229   :  { %v2718_v40 = vunpack.c.l.b16 %v2615_v45  ;;  %v2617_v19 = vpack.c.bf16 %v2593_v58, %v2593_v58  ;;  %v2618_v16 = vpack.c.bf16 %v2594_v60, %v2594_v60  ;;  %v2771_v62 = vrot.slane %v2722_v35, 2  ;;  %v3188_v58 = vld [vmem:[%s5049_s5] ss:$0 sm:$0xff] }
 0x22a   :  { %v2748_v4 = vsel %vm2727_vm13, %v5088_v10, %v5087_v3  ;;  %v2531_v46 = vmax.f32 %v2495_v15, -1e+30  ;;  %v2738_v38 = vrot.slane %v2717_v6, 3  ;;  %v2532_v47 = vmax.f32 %v2502_v52, -1e+30 }
 0x22b   :  { %v2750_v36 = vsel %vm2730_vm14, %v4915_v23, %v2748_v4  ;;  %v2755_v34 = vrot.slane %v2718_v40, 3  ;;  %v2720_v18 = vunpack.c.l.b16 %v2617_v19  ;;  %v2721_v27 = vunpack.c.l.b16 %v2618_v16 }
 0x22c   :  { %v2752_v51 = vsel %vm2733_vm15, %v4953_v25, %v2750_v36  ;;  %v2572_v32 = vadd.f32 %v4750_v20, %v2531_v46  ;;  %v2573_v23 = vadd.f32 %v4765_v13, %v2532_v47  ;;  %v2740_v30 = vsel %vm2739_vm1, %v2738_v38, %v2737_v56 }
 0x22d   :  { %v2754_v28 = vsel %vm2736_vm0, %v2753_v8, %v2752_v51  ;;  %v2766_v25 = vsel %vm2733_vm15, %v4907_v55, %v5089_v54  ;;  %v2741_v53 = vrot.slane %v2720_v18, 2  ;;  %v2757_v2 = vrot.slane %v2721_v27, 2  ;;  %v3682_v8 = vld [vmem:[#allocation5 + $0x90] sm:$0xff]  }
 0x22e   :  { %v2756_v59 = vsel %vm2739_vm1, %v2755_v34, %v2754_v28  ;;  %v2596_v42 = vmax.f32 %v2572_v32, 0.0  ;;  %v2768_v11 = vsel %vm2736_vm0, %v4941_v37, %v2766_v25  ;;  %v2597_v35 = vmax.f32 %v2573_v23, 0.0 }
 0x22f   :  { %v2770_v20 = vsel %vm2739_vm1, %v4909_v29, %v2768_v11  ;;  %v2773_v13 = vrot.slane %v2725_v31, 1  ;;  %v2743_v61 = vsel %vm2742_vm2, %v2741_v53, %v2740_v30  ;;  %v2758_v9 = vsel %vm2742_vm2, %v2757_v2, %v2756_v59  ;;  %v3680_v31 = vld [vmem:[#allocation5 + $0x80] sm:$0xff]  }
 0x230   :  { %v2620_v5 = vpack.c.bf16 %v2596_v42, %v2596_v42  ;;  %v2772_v55 = vsel %vm2742_vm2, %v2771_v62, %v2770_v20  ;;  %v2621_v50 = vpack.c.bf16 %v2597_v35, %v2597_v35  ;;  %v5090_v49 = vmov 0.0  }
 0x231   :  { %v2774_v41 = vsel %vm2745_vm3, %v2773_v13, %v2772_v55 }
 0x232   :  { %v2723_v57 = vunpack.c.l.b16 %v2620_v5  ;;  %v2724_v48 = vunpack.c.l.b16 %v2621_v50  ;;  %v2777_v33 = vpack.c.b16 %v2774_v41, %v2774_v41 }
 0x234   :  { %v2744_v37 = vrot.slane %v2723_v57, 1  ;;  %v2759_v22 = vrot.slane %v2724_v48, 1 }
 0x236   :  { %v2746_v12 = vsel %vm2745_vm3, %v2744_v37, %v2743_v61  ;;  %v2760_v29 = vsel %vm2745_vm3, %v2759_v22, %v2758_v9 }
 0x237   :  { %v2776_v43 = vpack.c.b16 %v2760_v29, %v2760_v29  ;;  %v2775_v14 = vpack.c.b16 %v2746_v12, %v2746_v12 }
 0x239   :  { %2957 = vmatprep.mubr.bf16.mxu1 %v2776_v43 }
 0x23a   :  { %2958 = vmatmul.mubr.bf16.vlgmr.msra.gmra.mrb[48].mxu1 %v2775_v14 }
 0x23b   :  { %3395 = vmatpush3.bf16.msra.mxu1 %v3680_v31  ;;  %3410 = vmatprep.mubr.msk.bf16.mxu1 %vm3772_vm4, %v5090_v49 }
 0x23c   :  { %3396 = vmatprep.subr.bf16.mxu1 %v5090_v49 }
 0x23f   :  { %3397 = vmatpush3.bf16.msra.mxu1 %v3681_v44 }
 0x240   :  { %3398 = vmatprep.subr.bf16.mxu1 %v5090_v49 }
 0x243   :  { %3399 = vmatpush3.bf16.msra.mxu1 %v3682_v8 }
 0x244   :  { %3400 = vmatprep.subr.bf16.mxu1 %v5090_v49 }
 0x247   :  { %3401 = vmatpush3.bf16.msra.mxu1 %v3683_v26 }
 0x248   :  { %3402 = vmatprep.subr.bf16.mxu1 %v5090_v49 }
 0x24b   :  { %3403 = vmatpush3.bf16.msra.mxu1 %v3684_v63 }
 0x24c   :  { %3404 = vmatprep.subr.bf16.mxu1 %v5090_v49 }
 0x24f   :  { %3405 = vmatpush3.bf16.msra.mxu1 %v3685_v1 }
 0x250   :  { %3406 = vmatprep.subr.bf16.mxu1 %v5090_v49 }
 0x253   :  { %3407 = vmatpush3.bf16.msra.mxu1 %v3686_v24 }
 0x254   :  { %3408 = vmatprep.subr.bf16.mxu1 %v5090_v49 }
 0x257   :  { %3409 = vmatpush3.bf16.msra.mxu1 %v3687_v7 }
 0x25a   :  { %3411 = vmatmul.mubr.bf16.vlgmr.msra.gmra.mrb[52].mxu1 %v2777_v33 }
 0x30d   :  { %v3279_v0 = vpop.f32.mrb[48].mxu1 }
 0x30e   :  { %v3280_v21 = vpop.f32.mrb[49].mxu1 }
 0x30f   :  { %v3281_v45 = vadd.f32 %v3280_v21, %v3279_v0  ;;  %v3282_v39 = vpop.f32.mrb[50].mxu1 }
 0x310   :  { %v3283_v56 = vpop.f32.mrb[51].mxu1 }
 0x311   :  { %v2960_v15 = vadd.f32 %v3281_v45, %v3188_v58 }
 0x32d   :  { %v2999_v60 = vpop.f32.mrb[52].mxu1 }
 0x32e   :  { %v3000_v17 = vadd.f32 %v2999_v60, %v2960_v15  ;;  %v3412_v3 = vpop.f32.mrb[53].mxu1 }
 0x32f   :  { %v3002_v10 = vpop.f32.mrb[54].mxu1 }
 0x330   :  { %3005 = vst [vmem:[#allocation7] sm:$0xff] %v3000_v17  ;;  %v3413_v4 = vpop.f32.mrb[55].mxu1 }
 0x331   :  { %3747 = shalt.err (!%p3744_p6)
}
 0x332   :  { %s3748_s5 = scalar_lea.hbm %s5050_s6, 128 }
 0x333   :  { %p3749_p7 = scmp.ne.s32.totalorder %s5050_s6, %s3748_s5  ;;  %p3752_p8 = scmp.lt.u32.totalorder %s3748_s5, %s5050_s6 }
 0x335   :  { %p3754_p9 = pnand %p3752_p8, %p3749_p7 }
 0x337   :  { %3757 = shalt.err (!%p3754_p9)
}
 0x338   :  { %3015 = dma.vmem_to_hbm [thread:$0]  %s3013_s13, 128, %s5050_s6, [#allocation4]  }
 0x339   :  { %3762 = dma.done.wait [#allocation4], 128  }
 0x33a   :  { %3763 = vsyncadd [#allocation4], 4294967168 }
 0x33b   :  { %3019 = vsyncpa [#allocation3], 1 }
 0x33c   :  { %3020 = vsyncpa [#allocation6], 1 }
 0x33d   :  { %3021 = vsyncpa [#allocation4], 1 }

</bundles_post_ra>
